<compile_context>
chip_gen: v7x
topology: tpu7x:2x2x1
jax: 0.10.0
libtpu: 0.0.40
codegen_flags: <defaults>
</compile_context>

<pallas_src>
import functools
import math

import jax
import jax.numpy as jnp
import numpy as np
from jax import lax
from jax.experimental import pallas as pl
from jax.experimental.pallas import tpu as pltpu


# ---------------------------------------------------------------------------
# Device-generation helpers (perf-only; never affect numerics)
# ---------------------------------------------------------------------------

def _tensorcores_per_chip():
    """2 on v7x (dual TensorCore), 1 on v5e/v6e.  Best-effort string sniff."""
    try:
        kind = jax.devices()[0].device_kind.lower()
    except Exception:
        return 1
    return 2 if "7" in kind else 1


def _default_batch_tile(batch):
    """v7x: one fat tile per TensorCore (grid of exactly 2 'parallel' steps).
    v5e/v6e: single TC -> collapse the grid to one step and fold all of B into
    the matmul M dimension (saves ~0.35us/step and feeds the MXU a taller LHS).
    """
    n_tc = _tensorcores_per_chip()
    if n_tc > 1 and batch % n_tc == 0:
        return batch // n_tc
    return batch


# ---------------------------------------------------------------------------
# Fused kernel
# ---------------------------------------------------------------------------

def _circ_conv_matmul(h, w_ref, b_ref, *, ks, dil, left, seq_len, batch_tile,
                      compute_dtype):
    """Circular 'same' dilated conv (BN folded) as ONE MXU matmul.

    h:     (batch_tile*seq_len, c_in) f32 activations; sample t occupies rows
           [t*seq_len, (t+1)*seq_len).
    w_ref: (ks*c_in, c_out) BN-folded weights, pre-cast to compute_dtype;
           tap j occupies rows [j*c_in, (j+1)*c_in).
    b_ref: (1, c_out) BN-folded bias (f32).

    Tap j of sample t reads h_t[(pos + j*dil - left) mod L], realised with
    pltpu.roll (static sublane rotate on the XLU) instead of a doubled slab
    plus unaligned slices.
    """
    L = seq_len
    if ks == 1:
        cat = h
    else:
        per_sample = []
        for t in range(batch_tile):
            xt = lax.slice_in_dim(h, t * L, (t + 1) * L, axis=0)   # (L, c_in)
            taps = []
            for j in range(ks):
                s = (left - j * dil) % L          # jnp.roll-style shift, static
                taps.append(xt if s == 0 else pltpu.roll(xt, s, axis=0))
            per_sample.append(jnp.concatenate(taps, axis=-1))      # (L, ks*c_in)
        cat = (per_sample[0] if batch_tile == 1
               else jnp.concatenate(per_sample, axis=0))  # (bt*L, ks*c_in)
    y = jnp.dot(cat.astype(compute_dtype), w_ref[...],
                preferred_element_type=jnp.float32)
    return y + b_ref[...]                                   # (bt*L, c_out) f32


def _cdil_stack_kernel(x_ref, *rest, block_meta, ks, batch_tile, seq_len,
                       compute_dtype):
    """Run ALL CDIL blocks for one batch tile, activations resident in VMEM.

    rest = (per-block param refs..., o_ref).  Per block the params are
    (w1, b1, w2, b2) plus (wres, bres) iff the block has a projection residual.
    block_meta is a static tuple of (dilation, has_res) per block.
    """
    o_ref = rest[-1]
    params = rest[:-1]
    L = seq_len

    # Load the batch tile once and fold it into the matmul M dimension:
    # activations live as a single (batch_tile*L, C) f32 slab for the stack.
    if batch_tile == 1:
        h = x_ref[0].astype(jnp.float32)
    else:
        h = jnp.concatenate([x_ref[t] for t in range(batch_tile)],
                            axis=0).astype(jnp.float32)

    idx = 0
    for dil, has_res in block_meta:
        left = (dil * (ks - 1)) // 2   # PyTorch 'same' left pad (odd ks, circular)
        w1, b1, w2, b2 = params[idx:idx + 4]
        idx += 4
        x_in = h
        # conv1 -> dropout(identity, eval) -> BN1(folded) -> ReLU
        a = jnp.maximum(
            _circ_conv_matmul(x_in, w1, b1, ks=ks, dil=dil, left=left,
                              seq_len=L, batch_tile=batch_tile,
                              compute_dtype=compute_dtype), 0.0)
        # conv2 -> dropout(identity, eval) -> BN2(folded) -> ReLU
        a = jnp.maximum(
            _circ_conv_matmul(a, w2, b2, ks=ks, dil=dil, left=left,
                              seq_len=L, batch_tile=batch_tile,
                              compute_dtype=compute_dtype), 0.0)
        if has_res:                     # 1x1 conv residual (c_in != c_out)
            wres, bres = params[idx:idx + 2]
            idx += 2
            res = jnp.dot(x_in.astype(compute_dtype), wres[...],
                          preferred_element_type=jnp.float32) + bres[...]
        else:                           # identity residual: no matmul
            res = x_in
        # PyTorch: relu(out) + res; `a` is already ReLU'd so the extra relu is
        # an exact no-op and is dropped.
        h = a + res

    # Store per sample with static row slices (layout-preserving: L % 8 == 0).
    for t in range(batch_tile):
        o_ref[t] = lax.slice_in_dim(h, t * L, (t + 1) * L,
                                    axis=0).astype(o_ref.dtype)


def cdil_stack_apply(x, blocks, ks, *, batch_tile=None,
                     compute_dtype=jnp.bfloat16):
    """Full fused Model4PretrainCDIL forward. x: (B, L, dim) -> (B, L, dim)."""
    B, L, dim = x.shape
    assert ks % 2 == 1, "odd kernel_size assumed (symmetric 'same' circular pad)"
    assert L % 8 == 0, "sequence length must be a multiple of the sublane tile (8)"
    if batch_tile is None:
        batch_tile = _default_batch_tile(B)
    assert B % batch_tile == 0, "batch must be divisible by batch_tile"

    x = x.astype(jnp.float32)

    flat_params = []
    in_specs = [pl.BlockSpec((batch_tile, L, dim), lambda b: (b, 0, 0))]
    block_meta = []
    for blk in blocks:
        ksz, c_in, hdim = blk["w1"].shape
        c_out = blk["w2"].shape[2]
        # Weights pre-cast to the MXU operand dtype on the host: no per-step
        # VPU casts in-kernel, and half the weight VMEM/DMA bytes when bf16.
        arrs = [blk["w1"].reshape(ksz * c_in, hdim).astype(compute_dtype),
                blk["b1"].astype(jnp.float32),
                blk["w2"].reshape(ksz * hdim, c_out).astype(compute_dtype),
                blk["b2"].astype(jnp.float32)]
        has_res = "wres" in blk
        if has_res:
            arrs += [blk["wres"].astype(compute_dtype),
                     blk["bres"].astype(jnp.float32)]
        for a in arrs:
            flat_params.append(a)
            in_specs.append(
                pl.BlockSpec(a.shape, lambda b, _n=a.ndim: (0,) * _n))
        block_meta.append((int(blk["dil"]), has_res))
    # TODO(synk): for deep stacks (20+ blocks) pack the per-block params into a
    # few flat VMEM slabs + static in-kernel slices to cut BlockSpec/DMA
    # descriptor count; at this depth separate small refs are simpler.

    c_final = blocks[-1]["w2"].shape[2]
    kernel = functools.partial(
        _cdil_stack_kernel, block_meta=tuple(block_meta), ks=ks,
        batch_tile=batch_tile, seq_len=L, compute_dtype=compute_dtype)

    # Generation-aware scoped-VMEM budget: usage here is a few hundred KiB, but
    # keep the cap well under v7x's 64 MiB physical VMEM while allowing more
    # headroom on v5e/v6e (128 MiB physical) for larger L / batch tiles.
    n_tc = _tensorcores_per_chip()
    vmem_limit = (32 if n_tc > 1 else 64) * 1024 * 1024

    return pl.pallas_call(
        kernel,
        out_shape=jax.ShapeDtypeStruct((B, L, c_final), jnp.float32),
        grid=(B // batch_tile,),
        in_specs=in_specs,
        out_specs=pl.BlockSpec((batch_tile, L, c_final), lambda b: (b, 0, 0)),
        compiler_params=pltpu.CompilerParams(
            dimension_semantics=("parallel",),   # batch grid -> both v7x TCs
            vmem_limit_bytes=vmem_limit,
        ),
    )(x, *flat_params)


# ---------------------------------------------------------------------------
# Parameter construction (shapes follow the PyTorch __init__; BN folded).
# ---------------------------------------------------------------------------

def _init_block_params(key, c_in, c_out, hdim, ks, dil):
    k1, k2, k3, k4, k5, k6 = jax.random.split(key, 6)
    s1 = 1.0 / math.sqrt(c_in * ks)
    w1 = jax.random.uniform(k1, (ks, c_in, hdim), jnp.float32, -s1, s1)
    s2 = 1.0 / math.sqrt(hdim * ks)
    w2 = jax.random.uniform(k2, (ks, hdim, c_out), jnp.float32, -s2, s2)

    eps = 1e-5

    def bn_fold(kk, c, w):
        # Eval-mode BatchNorm: y = conv(x)*scale + shift with
        # scale = gamma/sqrt(var+eps), shift = beta - mean*scale.  The conv has
        # no bias, so the affine folds exactly into the weights + a bias.
        ka, kb, kc, kd = jax.random.split(kk, 4)
        gamma = 1.0 + 0.1 * jax.random.normal(ka, (c,), jnp.float32)
        beta = 0.1 * jax.random.normal(kb, (c,), jnp.float32)
        mean = 0.1 * jax.random.normal(kc, (c,), jnp.float32)
        var = 1.0 + 0.1 * jnp.abs(jax.random.normal(kd, (c,), jnp.float32))
        scale = gamma * lax.rsqrt(var + eps)
        return w * scale[None, None, :], (beta - mean * scale)[None, :]

    w1f, b1 = bn_fold(k3, hdim, w1)
    w2f, b2 = bn_fold(k4, c_out, w2)

    blk = dict(w1=w1f, b1=b1, w2=w2f, b2=b2, dil=dil)
    if c_in != c_out:
        rs = 1.0 / math.sqrt(c_in)
        blk["wres"] = jax.random.uniform(k5, (c_in, c_out), jnp.float32, -rs, rs)
        blk["bres"] = jax.random.uniform(k6, (1, c_out), jnp.float32, -rs, rs)
    # else: res is None in PyTorch -> identity skip handled in-kernel (no matmul)
    return blk


def init_model_params(key, dim, hdim1, hdim2, ks, n_layers):
    blocks = []
    c_prev = dim
    for i in range(n_layers):                      # encoder: [hdim1]*n_layers
        key, sk = jax.random.split(key)
        blocks.append(_init_block_params(sk, c_prev, hdim1, hdim1 * 2, ks, 2 ** i))
        c_prev = hdim1
    hidden_list = [hdim2] * n_layers               # decoder: [hdim2]*, last = dim
    hidden_list[-1] = dim
    for i, c_out in enumerate(hidden_list):
        key, sk = jax.random.split(key)
        blocks.append(_init_block_params(sk, c_prev, c_out, hdim2 * 2, ks, 2 ** i))
        c_prev = c_out
    return blocks


def model_forward(x, blocks, ks, **kw):
    """Model4PretrainCDIL.forward: (B, L, dim) -> (B, L, dim)."""
    return cdil_stack_apply(x, blocks, ks, **kw)


# ---------------------------------------------------------------------------
# Pure-JAX reference (verification only): (ks, c_in, c_out) weight form and
# jnp.roll, independently validating the roll/concat/single-matmul indexing
# used inside the kernel.  Matmul operands are cast to the same compute_dtype
# as the kernel (f32 accumulation) so tolerances stay tight.
# ---------------------------------------------------------------------------

def _block_ref(x, blk, ks, compute_dtype):
    dil = blk["dil"]
    left = (dil * (ks - 1)) // 2

    def circ_conv(h, w, b):
        hb = h.astype(compute_dtype)
        acc = jnp.zeros(h.shape[:-1] + (w.shape[2],), jnp.float32)
        for j in range(ks):
            tap = jnp.roll(hb, left - j * dil, axis=1)
            acc = acc + jnp.einsum("blc,cd->bld", tap,
                                   w[j].astype(compute_dtype),
                                   preferred_element_type=jnp.float32)
        return acc + b

    h = jax.nn.relu(circ_conv(x, blk["w1"], blk["b1"]))
    out = jax.nn.relu(circ_conv(h, blk["w2"], blk["b2"]))
    if "wres" in blk:
        res = jnp.einsum("blc,cd->bld", x.astype(compute_dtype),
                         blk["wres"].astype(compute_dtype),
                         preferred_element_type=jnp.float32) + blk["bres"]
    else:
        res = x
    return jax.nn.relu(out) + res


def model_forward_ref(x, blocks, ks, compute_dtype=jnp.bfloat16):
    h = x.astype(jnp.float32)
    for blk in blocks:
        h = _block_ref(h, blk, ks, compute_dtype)
    return h


if __name__ == "__main__":
    # Small shapes consistent with the module's forward.
    B, L, dim = 2, 16, 8
    hdim1, hdim2, kernel_size, n_layers = 16, 16, 3, 2
    # TODO(synk): dropout and BatchNorm use eval-mode semantics (dropout =
    # identity, BN = running-stats affine folded into the conv weights);
    # training-mode batch statistics / dropout RNG are not modeled.

    key = jax.random.PRNGKey(0)
    key, xk = jax.random.split(key)
    x = jax.random.normal(xk, (B, L, dim), jnp.float32)   # (batch, seq, dim)

    blocks = init_model_params(key, dim, hdim1, hdim2, kernel_size, n_layers)

    compute_dtype = jnp.bfloat16            # bf16 MXU operands, f32 accumulate
    y = model_forward(x, blocks, kernel_size, compute_dtype=compute_dtype)
    y = jax.block_until_ready(y)

    y_ref = model_forward_ref(x, blocks, kernel_size, compute_dtype=compute_dtype)
    # Reference uses identical bf16 operands; remaining delta is f32
    # accumulation-order only, so a modest tolerance suffices.
    np.testing.assert_allclose(np.asarray(y), np.asarray(y_ref),
                               rtol=5e-3, atol=5e-3)
    assert y.shape == (B, L, dim)
    print("KERNEL_OK")
</pallas_src>

<mosaic_0001>
module attributes {stable_mosaic.version = 11 : i64} {
  func.func @_cdil_stack_kernel(%arg0: i32, %arg1: memref<2x16x8xf32, #tpu.memory_space<vmem>>, %arg2: memref<24x32xbf16, #tpu.memory_space<vmem>>, %arg3: memref<1x32xf32, #tpu.memory_space<vmem>>, %arg4: memref<96x16xbf16, #tpu.memory_space<vmem>>, %arg5: memref<1x16xf32, #tpu.memory_space<vmem>>, %arg6: memref<8x16xbf16, #tpu.memory_space<vmem>>, %arg7: memref<1x16xf32, #tpu.memory_space<vmem>>, %arg8: memref<48x32xbf16, #tpu.memory_space<vmem>>, %arg9: memref<1x32xf32, #tpu.memory_space<vmem>>, %arg10: memref<96x16xbf16, #tpu.memory_space<vmem>>, %arg11: memref<1x16xf32, #tpu.memory_space<vmem>>, %arg12: memref<48x32xbf16, #tpu.memory_space<vmem>>, %arg13: memref<1x32xf32, #tpu.memory_space<vmem>>, %arg14: memref<96x16xbf16, #tpu.memory_space<vmem>>, %arg15: memref<1x16xf32, #tpu.memory_space<vmem>>, %arg16: memref<48x32xbf16, #tpu.memory_space<vmem>>, %arg17: memref<1x32xf32, #tpu.memory_space<vmem>>, %arg18: memref<96x8xbf16, #tpu.memory_space<vmem>>, %arg19: memref<1x8xf32, #tpu.memory_space<vmem>>, %arg20: memref<16x8xbf16, #tpu.memory_space<vmem>>, %arg21: memref<1x8xf32, #tpu.memory_space<vmem>>, %arg22: memref<2x16x8xf32, #tpu.memory_space<vmem>>) attributes {dimension_semantics = [#tpu.dimension_semantics<parallel>], iteration_bounds = array<i64: 1>, scalar_prefetch = 0 : i64, scratch_operands = 0 : i64, tpu.core_type = #tpu.core_type<tc>, window_params = [{transform_indices = @transform_0, window_bounds = array<i64: 2, 16, 8>}, {pipeline_mode = #tpu.pipeline_mode<synchronous>, transform_indices = @transform_1, window_bounds = array<i64: 24, 32>}, {pipeline_mode = #tpu.pipeline_mode<synchronous>, transform_indices = @transform_2, window_bounds = array<i64: 1, 32>}, {pipeline_mode = #tpu.pipeline_mode<synchronous>, transform_indices = @transform_3, window_bounds = array<i64: 96, 16>}, {pipeline_mode = #tpu.pipeline_mode<synchronous>, transform_indices = @transform_4, window_bounds = array<i64: 1, 16>}, {pipeline_mode = #tpu.pipeline_mode<synchronous>, transform_indices = @transform_5, window_bounds = array<i64: 8, 16>}, {pipeline_mode = #tpu.pipeline_mode<synchronous>, transform_indices = @transform_6, window_bounds = array<i64: 1, 16>}, {pipeline_mode = #tpu.pipeline_mode<synchronous>, transform_indices = @transform_7, window_bounds = array<i64: 48, 32>}, {pipeline_mode = #tpu.pipeline_mode<synchronous>, transform_indices = @transform_8, window_bounds = array<i64: 1, 32>}, {pipeline_mode = #tpu.pipeline_mode<synchronous>, transform_indices = @transform_9, window_bounds = array<i64: 96, 16>}, {pipeline_mode = #tpu.pipeline_mode<synchronous>, transform_indices = @transform_10, window_bounds = array<i64: 1, 16>}, {pipeline_mode = #tpu.pipeline_mode<synchronous>, transform_indices = @transform_11, window_bounds = array<i64: 48, 32>}, {pipeline_mode = #tpu.pipeline_mode<synchronous>, transform_indices = @transform_12, window_bounds = array<i64: 1, 32>}, {pipeline_mode = #tpu.pipeline_mode<synchronous>, transform_indices = @transform_13, window_bounds = array<i64: 96, 16>}, {pipeline_mode = #tpu.pipeline_mode<synchronous>, transform_indices = @transform_14, window_bounds = array<i64: 1, 16>}, {pipeline_mode = #tpu.pipeline_mode<synchronous>, transform_indices = @transform_15, window_bounds = array<i64: 48, 32>}, {pipeline_mode = #tpu.pipeline_mode<synchronous>, transform_indices = @transform_16, window_bounds = array<i64: 1, 32>}, {pipeline_mode = #tpu.pipeline_mode<synchronous>, transform_indices = @transform_17, window_bounds = array<i64: 96, 8>}, {pipeline_mode = #tpu.pipeline_mode<synchronous>, transform_indices = @transform_18, window_bounds = array<i64: 1, 8>}, {pipeline_mode = #tpu.pipeline_mode<synchronous>, transform_indices = @transform_19, window_bounds = array<i64: 16, 8>}, {pipeline_mode = #tpu.pipeline_mode<synchronous>, transform_indices = @transform_20, window_bounds = array<i64: 1, 8>}, {transform_indices = @transform_21, window_bounds = array<i64: 2, 16, 8>}]} {
    %c0 = arith.constant 0 : index
    %c0_0 = arith.constant 0 : index
    %c0_1 = arith.constant 0 : index
    %0 = vector.load %arg1[%c0, %c0_0, %c0_1] : memref<2x16x8xf32, #tpu.memory_space<vmem>>, vector<1x16x8xf32>
    %1 = vector.shape_cast %0 : vector<1x16x8xf32> to vector<16x8xf32>
    %c1 = arith.constant 1 : index
    %c0_2 = arith.constant 0 : index
    %c0_3 = arith.constant 0 : index
    %2 = vector.load %arg1[%c1, %c0_2, %c0_3] : memref<2x16x8xf32, #tpu.memory_space<vmem>>, vector<1x16x8xf32>
    %3 = vector.shape_cast %2 : vector<1x16x8xf32> to vector<16x8xf32>
    %4 = tpu.concatenate %1, %3 in 0 : vector<16x8xf32>, vector<16x8xf32> -> vector<32x8xf32>
    %5 = vector.extract_strided_slice %4 {offsets = [0, 0], sizes = [16, 8], strides = [1, 1]} : vector<32x8xf32> to vector<16x8xf32>
    %c1_i32 = arith.constant 1 : i32
    %6 = tpu.dynamic_rotate %5 by %c1_i32 dim 0 : vector<16x8xf32>, i32 -> vector<16x8xf32>
    %c15_i32 = arith.constant 15 : i32
    %7 = tpu.dynamic_rotate %5 by %c15_i32 dim 0 : vector<16x8xf32>, i32 -> vector<16x8xf32>
    %8 = tpu.concatenate %6, %5, %7 in 1 : vector<16x8xf32>, vector<16x8xf32>, vector<16x8xf32> -> vector<16x24xf32>
    %9 = vector.extract_strided_slice %4 {offsets = [16, 0], sizes = [16, 8], strides = [1, 1]} : vector<32x8xf32> to vector<16x8xf32>
    %c1_i32_4 = arith.constant 1 : i32
    %10 = tpu.dynamic_rotate %9 by %c1_i32_4 dim 0 : vector<16x8xf32>, i32 -> vector<16x8xf32>
    %c15_i32_5 = arith.constant 15 : i32
    %11 = tpu.dynamic_rotate %9 by %c15_i32_5 dim 0 : vector<16x8xf32>, i32 -> vector<16x8xf32>
    %12 = tpu.concatenate %10, %9, %11 in 1 : vector<16x8xf32>, vector<16x8xf32>, vector<16x8xf32> -> vector<16x24xf32>
    %13 = tpu.concatenate %8, %12 in 0 : vector<16x24xf32>, vector<16x24xf32> -> vector<32x24xf32>
    %14 = arith.truncf %13 : vector<32x24xf32> to vector<32x24xbf16>
    %c0_6 = arith.constant 0 : index
    %c0_7 = arith.constant 0 : index
    %15 = vector.load %arg2[%c0_6, %c0_7] : memref<24x32xbf16, #tpu.memory_space<vmem>>, vector<24x32xbf16>
    %cst = arith.constant dense<0.000000e+00> : vector<32x32xf32>
    %16 = tpu.matmul %14, %15, %cst {dimension_numbers = #tpu.dot_dimension_numbers<[1], [0], [0], [1], [0, 0, 1, 1], [], []>} : vector<32x24xbf16>, vector<24x32xbf16>, vector<32x32xf32> -> vector<32x32xf32>
    %c0_8 = arith.constant 0 : index
    %c0_9 = arith.constant 0 : index
    %17 = vector.load %arg3[%c0_8, %c0_9] : memref<1x32xf32, #tpu.memory_space<vmem>>, vector<1x32xf32>
    %18 = vector.broadcast %17 : vector<1x32xf32> to vector<32x32xf32>
    %19 = arith.addf %16, %18 : vector<32x32xf32>
    %cst_10 = arith.constant 0.000000e+00 : f32
    %20 = vector.broadcast %cst_10 : f32 to vector<32x32xf32>
    %21 = arith.maximumf %19, %20 : vector<32x32xf32>
    %22 = vector.extract_strided_slice %21 {offsets = [0, 0], sizes = [16, 32], strides = [1, 1]} : vector<32x32xf32> to vector<16x32xf32>
    %c1_i32_11 = arith.constant 1 : i32
    %23 = tpu.dynamic_rotate %22 by %c1_i32_11 dim 0 : vector<16x32xf32>, i32 -> vector<16x32xf32>
    %c15_i32_12 = arith.constant 15 : i32
    %24 = tpu.dynamic_rotate %22 by %c15_i32_12 dim 0 : vector<16x32xf32>, i32 -> vector<16x32xf32>
    %25 = tpu.concatenate %23, %22, %24 in 1 : vector<16x32xf32>, vector<16x32xf32>, vector<16x32xf32> -> vector<16x96xf32>
    %26 = vector.extract_strided_slice %21 {offsets = [16, 0], sizes = [16, 32], strides = [1, 1]} : vector<32x32xf32> to vector<16x32xf32>
    %c1_i32_13 = arith.constant 1 : i32
    %27 = tpu.dynamic_rotate %26 by %c1_i32_13 dim 0 : vector<16x32xf32>, i32 -> vector<16x32xf32>
    %c15_i32_14 = arith.constant 15 : i32
    %28 = tpu.dynamic_rotate %26 by %c15_i32_14 dim 0 : vector<16x32xf32>, i32 -> vector<16x32xf32>
    %29 = tpu.concatenate %27, %26, %28 in 1 : vector<16x32xf32>, vector<16x32xf32>, vector<16x32xf32> -> vector<16x96xf32>
    %30 = tpu.concatenate %25, %29 in 0 : vector<16x96xf32>, vector<16x96xf32> -> vector<32x96xf32>
    %31 = arith.truncf %30 : vector<32x96xf32> to vector<32x96xbf16>
    %c0_15 = arith.constant 0 : index
    %c0_16 = arith.constant 0 : index
    %32 = vector.load %arg4[%c0_15, %c0_16] : memref<96x16xbf16, #tpu.memory_space<vmem>>, vector<96x16xbf16>
    %cst_17 = arith.constant dense<0.000000e+00> : vector<32x16xf32>
    %33 = tpu.matmul %31, %32, %cst_17 {dimension_numbers = #tpu.dot_dimension_numbers<[1], [0], [0], [1], [0, 0, 1, 1], [], []>} : vector<32x96xbf16>, vector<96x16xbf16>, vector<32x16xf32> -> vector<32x16xf32>
    %c0_18 = arith.constant 0 : index
    %c0_19 = arith.constant 0 : index
    %34 = vector.load %arg5[%c0_18, %c0_19] : memref<1x16xf32, #tpu.memory_space<vmem>>, vector<1x16xf32>
    %35 = vector.broadcast %34 : vector<1x16xf32> to vector<32x16xf32>
    %36 = arith.addf %33, %35 : vector<32x16xf32>
    %cst_20 = arith.constant 0.000000e+00 : f32
    %37 = vector.broadcast %cst_20 : f32 to vector<32x16xf32>
    %38 = arith.maximumf %36, %37 : vector<32x16xf32>
    %39 = arith.truncf %4 : vector<32x8xf32> to vector<32x8xbf16>
    %c0_21 = arith.constant 0 : index
    %c0_22 = arith.constant 0 : index
    %40 = vector.load %arg6[%c0_21, %c0_22] : memref<8x16xbf16, #tpu.memory_space<vmem>>, vector<8x16xbf16>
    %cst_23 = arith.constant dense<0.000000e+00> : vector<32x16xf32>
    %41 = tpu.matmul %39, %40, %cst_23 {dimension_numbers = #tpu.dot_dimension_numbers<[1], [0], [0], [1], [0, 0, 1, 1], [], []>} : vector<32x8xbf16>, vector<8x16xbf16>, vector<32x16xf32> -> vector<32x16xf32>
    %c0_24 = arith.constant 0 : index
    %c0_25 = arith.constant 0 : index
    %42 = vector.load %arg7[%c0_24, %c0_25] : memref<1x16xf32, #tpu.memory_space<vmem>>, vector<1x16xf32>
    %43 = vector.broadcast %42 : vector<1x16xf32> to vector<32x16xf32>
    %44 = arith.addf %41, %43 : vector<32x16xf32>
    %45 = arith.addf %38, %44 : vector<32x16xf32>
    %46 = vector.extract_strided_slice %45 {offsets = [0, 0], sizes = [16, 16], strides = [1, 1]} : vector<32x16xf32> to vector<16x16xf32>
    %c2_i32 = arith.constant 2 : i32
    %47 = tpu.dynamic_rotate %46 by %c2_i32 dim 0 : vector<16x16xf32>, i32 -> vector<16x16xf32>
    %c14_i32 = arith.constant 14 : i32
    %48 = tpu.dynamic_rotate %46 by %c14_i32 dim 0 : vector<16x16xf32>, i32 -> vector<16x16xf32>
    %49 = tpu.concatenate %47, %46, %48 in 1 : vector<16x16xf32>, vector<16x16xf32>, vector<16x16xf32> -> vector<16x48xf32>
    %50 = vector.extract_strided_slice %45 {offsets = [16, 0], sizes = [16, 16], strides = [1, 1]} : vector<32x16xf32> to vector<16x16xf32>
    %c2_i32_26 = arith.constant 2 : i32
    %51 = tpu.dynamic_rotate %50 by %c2_i32_26 dim 0 : vector<16x16xf32>, i32 -> vector<16x16xf32>
    %c14_i32_27 = arith.constant 14 : i32
    %52 = tpu.dynamic_rotate %50 by %c14_i32_27 dim 0 : vector<16x16xf32>, i32 -> vector<16x16xf32>
    %53 = tpu.concatenate %51, %50, %52 in 1 : vector<16x16xf32>, vector<16x16xf32>, vector<16x16xf32> -> vector<16x48xf32>
    %54 = tpu.concatenate %49, %53 in 0 : vector<16x48xf32>, vector<16x48xf32> -> vector<32x48xf32>
    %55 = arith.truncf %54 : vector<32x48xf32> to vector<32x48xbf16>
    %c0_28 = arith.constant 0 : index
    %c0_29 = arith.constant 0 : index
    %56 = vector.load %arg8[%c0_28, %c0_29] : memref<48x32xbf16, #tpu.memory_space<vmem>>, vector<48x32xbf16>
    %cst_30 = arith.constant dense<0.000000e+00> : vector<32x32xf32>
    %57 = tpu.matmul %55, %56, %cst_30 {dimension_numbers = #tpu.dot_dimension_numbers<[1], [0], [0], [1], [0, 0, 1, 1], [], []>} : vector<32x48xbf16>, vector<48x32xbf16>, vector<32x32xf32> -> vector<32x32xf32>
    %c0_31 = arith.constant 0 : index
    %c0_32 = arith.constant 0 : index
    %58 = vector.load %arg9[%c0_31, %c0_32] : memref<1x32xf32, #tpu.memory_space<vmem>>, vector<1x32xf32>
    %59 = vector.broadcast %58 : vector<1x32xf32> to vector<32x32xf32>
    %60 = arith.addf %57, %59 : vector<32x32xf32>
    %cst_33 = arith.constant 0.000000e+00 : f32
    %61 = vector.broadcast %cst_33 : f32 to vector<32x32xf32>
    %62 = arith.maximumf %60, %61 : vector<32x32xf32>
    %63 = vector.extract_strided_slice %62 {offsets = [0, 0], sizes = [16, 32], strides = [1, 1]} : vector<32x32xf32> to vector<16x32xf32>
    %c2_i32_34 = arith.constant 2 : i32
    %64 = tpu.dynamic_rotate %63 by %c2_i32_34 dim 0 : vector<16x32xf32>, i32 -> vector<16x32xf32>
    %c14_i32_35 = arith.constant 14 : i32
    %65 = tpu.dynamic_rotate %63 by %c14_i32_35 dim 0 : vector<16x32xf32>, i32 -> vector<16x32xf32>
    %66 = tpu.concatenate %64, %63, %65 in 1 : vector<16x32xf32>, vector<16x32xf32>, vector<16x32xf32> -> vector<16x96xf32>
    %67 = vector.extract_strided_slice %62 {offsets = [16, 0], sizes = [16, 32], strides = [1, 1]} : vector<32x32xf32> to vector<16x32xf32>
    %c2_i32_36 = arith.constant 2 : i32
    %68 = tpu.dynamic_rotate %67 by %c2_i32_36 dim 0 : vector<16x32xf32>, i32 -> vector<16x32xf32>
    %c14_i32_37 = arith.constant 14 : i32
    %69 = tpu.dynamic_rotate %67 by %c14_i32_37 dim 0 : vector<16x32xf32>, i32 -> vector<16x32xf32>
    %70 = tpu.concatenate %68, %67, %69 in 1 : vector<16x32xf32>, vector<16x32xf32>, vector<16x32xf32> -> vector<16x96xf32>
    %71 = tpu.concatenate %66, %70 in 0 : vector<16x96xf32>, vector<16x96xf32> -> vector<32x96xf32>
    %72 = arith.truncf %71 : vector<32x96xf32> to vector<32x96xbf16>
    %c0_38 = arith.constant 0 : index
    %c0_39 = arith.constant 0 : index
    %73 = vector.load %arg10[%c0_38, %c0_39] : memref<96x16xbf16, #tpu.memory_space<vmem>>, vector<96x16xbf16>
    %cst_40 = arith.constant dense<0.000000e+00> : vector<32x16xf32>
    %74 = tpu.matmul %72, %73, %cst_40 {dimension_numbers = #tpu.dot_dimension_numbers<[1], [0], [0], [1], [0, 0, 1, 1], [], []>} : vector<32x96xbf16>, vector<96x16xbf16>, vector<32x16xf32> -> vector<32x16xf32>
    %c0_41 = arith.constant 0 : index
    %c0_42 = arith.constant 0 : index
    %75 = vector.load %arg11[%c0_41, %c0_42] : memref<1x16xf32, #tpu.memory_space<vmem>>, vector<1x16xf32>
    %76 = vector.broadcast %75 : vector<1x16xf32> to vector<32x16xf32>
    %77 = arith.addf %74, %76 : vector<32x16xf32>
    %cst_43 = arith.constant 0.000000e+00 : f32
    %78 = vector.broadcast %cst_43 : f32 to vector<32x16xf32>
    %79 = arith.maximumf %77, %78 : vector<32x16xf32>
    %80 = arith.addf %79, %45 : vector<32x16xf32>
    %81 = vector.extract_strided_slice %80 {offsets = [0, 0], sizes = [16, 16], strides = [1, 1]} : vector<32x16xf32> to vector<16x16xf32>
    %c1_i32_44 = arith.constant 1 : i32
    %82 = tpu.dynamic_rotate %81 by %c1_i32_44 dim 0 : vector<16x16xf32>, i32 -> vector<16x16xf32>
    %c15_i32_45 = arith.constant 15 : i32
    %83 = tpu.dynamic_rotate %81 by %c15_i32_45 dim 0 : vector<16x16xf32>, i32 -> vector<16x16xf32>
    %84 = tpu.concatenate %82, %81, %83 in 1 : vector<16x16xf32>, vector<16x16xf32>, vector<16x16xf32> -> vector<16x48xf32>
    %85 = vector.extract_strided_slice %80 {offsets = [16, 0], sizes = [16, 16], strides = [1, 1]} : vector<32x16xf32> to vector<16x16xf32>
    %c1_i32_46 = arith.constant 1 : i32
    %86 = tpu.dynamic_rotate %85 by %c1_i32_46 dim 0 : vector<16x16xf32>, i32 -> vector<16x16xf32>
    %c15_i32_47 = arith.constant 15 : i32
    %87 = tpu.dynamic_rotate %85 by %c15_i32_47 dim 0 : vector<16x16xf32>, i32 -> vector<16x16xf32>
    %88 = tpu.concatenate %86, %85, %87 in 1 : vector<16x16xf32>, vector<16x16xf32>, vector<16x16xf32> -> vector<16x48xf32>
    %89 = tpu.concatenate %84, %88 in 0 : vector<16x48xf32>, vector<16x48xf32> -> vector<32x48xf32>
    %90 = arith.truncf %89 : vector<32x48xf32> to vector<32x48xbf16>
    %c0_48 = arith.constant 0 : index
    %c0_49 = arith.constant 0 : index
    %91 = vector.load %arg12[%c0_48, %c0_49] : memref<48x32xbf16, #tpu.memory_space<vmem>>, vector<48x32xbf16>
    %cst_50 = arith.constant dense<0.000000e+00> : vector<32x32xf32>
    %92 = tpu.matmul %90, %91, %cst_50 {dimension_numbers = #tpu.dot_dimension_numbers<[1], [0], [0], [1], [0, 0, 1, 1], [], []>} : vector<32x48xbf16>, vector<48x32xbf16>, vector<32x32xf32> -> vector<32x32xf32>
    %c0_51 = arith.constant 0 : index
    %c0_52 = arith.constant 0 : index
    %93 = vector.load %arg13[%c0_51, %c0_52] : memref<1x32xf32, #tpu.memory_space<vmem>>, vector<1x32xf32>
    %94 = vector.broadcast %93 : vector<1x32xf32> to vector<32x32xf32>
    %95 = arith.addf %92, %94 : vector<32x32xf32>
    %cst_53 = arith.constant 0.000000e+00 : f32
    %96 = vector.broadcast %cst_53 : f32 to vector<32x32xf32>
    %97 = arith.maximumf %95, %96 : vector<32x32xf32>
    %98 = vector.extract_strided_slice %97 {offsets = [0, 0], sizes = [16, 32], strides = [1, 1]} : vector<32x32xf32> to vector<16x32xf32>
    %c1_i32_54 = arith.constant 1 : i32
    %99 = tpu.dynamic_rotate %98 by %c1_i32_54 dim 0 : vector<16x32xf32>, i32 -> vector<16x32xf32>
    %c15_i32_55 = arith.constant 15 : i32
    %100 = tpu.dynamic_rotate %98 by %c15_i32_55 dim 0 : vector<16x32xf32>, i32 -> vector<16x32xf32>
    %101 = tpu.concatenate %99, %98, %100 in 1 : vector<16x32xf32>, vector<16x32xf32>, vector<16x32xf32> -> vector<16x96xf32>
    %102 = vector.extract_strided_slice %97 {offsets = [16, 0], sizes = [16, 32], strides = [1, 1]} : vector<32x32xf32> to vector<16x32xf32>
    %c1_i32_56 = arith.constant 1 : i32
    %103 = tpu.dynamic_rotate %102 by %c1_i32_56 dim 0 : vector<16x32xf32>, i32 -> vector<16x32xf32>
    %c15_i32_57 = arith.constant 15 : i32
    %104 = tpu.dynamic_rotate %102 by %c15_i32_57 dim 0 : vector<16x32xf32>, i32 -> vector<16x32xf32>
    %105 = tpu.concatenate %103, %102, %104 in 1 : vector<16x32xf32>, vector<16x32xf32>, vector<16x32xf32> -> vector<16x96xf32>
    %106 = tpu.concatenate %101, %105 in 0 : vector<16x96xf32>, vector<16x96xf32> -> vector<32x96xf32>
    %107 = arith.truncf %106 : vector<32x96xf32> to vector<32x96xbf16>
    %c0_58 = arith.constant 0 : index
    %c0_59 = arith.constant 0 : index
    %108 = vector.load %arg14[%c0_58, %c0_59] : memref<96x16xbf16, #tpu.memory_space<vmem>>, vector<96x16xbf16>
    %cst_60 = arith.constant dense<0.000000e+00> : vector<32x16xf32>
    %109 = tpu.matmul %107, %108, %cst_60 {dimension_numbers = #tpu.dot_dimension_numbers<[1], [0], [0], [1], [0, 0, 1, 1], [], []>} : vector<32x96xbf16>, vector<96x16xbf16>, vector<32x16xf32> -> vector<32x16xf32>
    %c0_61 = arith.constant 0 : index
    %c0_62 = arith.constant 0 : index
    %110 = vector.load %arg15[%c0_61, %c0_62] : memref<1x16xf32, #tpu.memory_space<vmem>>, vector<1x16xf32>
    %111 = vector.broadcast %110 : vector<1x16xf32> to vector<32x16xf32>
    %112 = arith.addf %109, %111 : vector<32x16xf32>
    %cst_63 = arith.constant 0.000000e+00 : f32
    %113 = vector.broadcast %cst_63 : f32 to vector<32x16xf32>
    %114 = arith.maximumf %112, %113 : vector<32x16xf32>
    %115 = arith.addf %114, %80 : vector<32x16xf32>
    %116 = vector.extract_strided_slice %115 {offsets = [0, 0], sizes = [16, 16], strides = [1, 1]} : vector<32x16xf32> to vector<16x16xf32>
    %c2_i32_64 = arith.constant 2 : i32
    %117 = tpu.dynamic_rotate %116 by %c2_i32_64 dim 0 : vector<16x16xf32>, i32 -> vector<16x16xf32>
    %c14_i32_65 = arith.constant 14 : i32
    %118 = tpu.dynamic_rotate %116 by %c14_i32_65 dim 0 : vector<16x16xf32>, i32 -> vector<16x16xf32>
    %119 = tpu.concatenate %117, %116, %118 in 1 : vector<16x16xf32>, vector<16x16xf32>, vector<16x16xf32> -> vector<16x48xf32>
    %120 = vector.extract_strided_slice %115 {offsets = [16, 0], sizes = [16, 16], strides = [1, 1]} : vector<32x16xf32> to vector<16x16xf32>
    %c2_i32_66 = arith.constant 2 : i32
    %121 = tpu.dynamic_rotate %120 by %c2_i32_66 dim 0 : vector<16x16xf32>, i32 -> vector<16x16xf32>
    %c14_i32_67 = arith.constant 14 : i32
    %122 = tpu.dynamic_rotate %120 by %c14_i32_67 dim 0 : vector<16x16xf32>, i32 -> vector<16x16xf32>
    %123 = tpu.concatenate %121, %120, %122 in 1 : vector<16x16xf32>, vector<16x16xf32>, vector<16x16xf32> -> vector<16x48xf32>
    %124 = tpu.concatenate %119, %123 in 0 : vector<16x48xf32>, vector<16x48xf32> -> vector<32x48xf32>
    %125 = arith.truncf %124 : vector<32x48xf32> to vector<32x48xbf16>
    %c0_68 = arith.constant 0 : index
    %c0_69 = arith.constant 0 : index
    %126 = vector.load %arg16[%c0_68, %c0_69] : memref<48x32xbf16, #tpu.memory_space<vmem>>, vector<48x32xbf16>
    %cst_70 = arith.constant dense<0.000000e+00> : vector<32x32xf32>
    %127 = tpu.matmul %125, %126, %cst_70 {dimension_numbers = #tpu.dot_dimension_numbers<[1], [0], [0], [1], [0, 0, 1, 1], [], []>} : vector<32x48xbf16>, vector<48x32xbf16>, vector<32x32xf32> -> vector<32x32xf32>
    %c0_71 = arith.constant 0 : index
    %c0_72 = arith.constant 0 : index
    %128 = vector.load %arg17[%c0_71, %c0_72] : memref<1x32xf32, #tpu.memory_space<vmem>>, vector<1x32xf32>
    %129 = vector.broadcast %128 : vector<1x32xf32> to vector<32x32xf32>
    %130 = arith.addf %127, %129 : vector<32x32xf32>
    %cst_73 = arith.constant 0.000000e+00 : f32
    %131 = vector.broadcast %cst_73 : f32 to vector<32x32xf32>
    %132 = arith.maximumf %130, %131 : vector<32x32xf32>
    %133 = vector.extract_strided_slice %132 {offsets = [0, 0], sizes = [16, 32], strides = [1, 1]} : vector<32x32xf32> to vector<16x32xf32>
    %c2_i32_74 = arith.constant 2 : i32
    %134 = tpu.dynamic_rotate %133 by %c2_i32_74 dim 0 : vector<16x32xf32>, i32 -> vector<16x32xf32>
    %c14_i32_75 = arith.constant 14 : i32
    %135 = tpu.dynamic_rotate %133 by %c14_i32_75 dim 0 : vector<16x32xf32>, i32 -> vector<16x32xf32>
    %136 = tpu.concatenate %134, %133, %135 in 1 : vector<16x32xf32>, vector<16x32xf32>, vector<16x32xf32> -> vector<16x96xf32>
    %137 = vector.extract_strided_slice %132 {offsets = [16, 0], sizes = [16, 32], strides = [1, 1]} : vector<32x32xf32> to vector<16x32xf32>
    %c2_i32_76 = arith.constant 2 : i32
    %138 = tpu.dynamic_rotate %137 by %c2_i32_76 dim 0 : vector<16x32xf32>, i32 -> vector<16x32xf32>
    %c14_i32_77 = arith.constant 14 : i32
    %139 = tpu.dynamic_rotate %137 by %c14_i32_77 dim 0 : vector<16x32xf32>, i32 -> vector<16x32xf32>
    %140 = tpu.concatenate %138, %137, %139 in 1 : vector<16x32xf32>, vector<16x32xf32>, vector<16x32xf32> -> vector<16x96xf32>
    %141 = tpu.concatenate %136, %140 in 0 : vector<16x96xf32>, vector<16x96xf32> -> vector<32x96xf32>
    %142 = arith.truncf %141 : vector<32x96xf32> to vector<32x96xbf16>
    %c0_78 = arith.constant 0 : index
    %c0_79 = arith.constant 0 : index
    %143 = vector.load %arg18[%c0_78, %c0_79] : memref<96x8xbf16, #tpu.memory_space<vmem>>, vector<96x8xbf16>
    %cst_80 = arith.constant dense<0.000000e+00> : vector<32x8xf32>
    %144 = tpu.matmul %142, %143, %cst_80 {dimension_numbers = #tpu.dot_dimension_numbers<[1], [0], [0], [1], [0, 0, 1, 1], [], []>} : vector<32x96xbf16>, vector<96x8xbf16>, vector<32x8xf32> -> vector<32x8xf32>
    %c0_81 = arith.constant 0 : index
    %c0_82 = arith.constant 0 : index
    %145 = vector.load %arg19[%c0_81, %c0_82] : memref<1x8xf32, #tpu.memory_space<vmem>>, vector<1x8xf32>
    %146 = vector.broadcast %145 : vector<1x8xf32> to vector<32x8xf32>
    %147 = arith.addf %144, %146 : vector<32x8xf32>
    %cst_83 = arith.constant 0.000000e+00 : f32
    %148 = vector.broadcast %cst_83 : f32 to vector<32x8xf32>
    %149 = arith.maximumf %147, %148 : vector<32x8xf32>
    %150 = arith.truncf %115 : vector<32x16xf32> to vector<32x16xbf16>
    %c0_84 = arith.constant 0 : index
    %c0_85 = arith.constant 0 : index
    %151 = vector.load %arg20[%c0_84, %c0_85] : memref<16x8xbf16, #tpu.memory_space<vmem>>, vector<16x8xbf16>
    %cst_86 = arith.constant dense<0.000000e+00> : vector<32x8xf32>
    %152 = tpu.matmul %150, %151, %cst_86 {dimension_numbers = #tpu.dot_dimension_numbers<[1], [0], [0], [1], [0, 0, 1, 1], [], []>} : vector<32x16xbf16>, vector<16x8xbf16>, vector<32x8xf32> -> vector<32x8xf32>
    %c0_87 = arith.constant 0 : index
    %c0_88 = arith.constant 0 : index
    %153 = vector.load %arg21[%c0_87, %c0_88] : memref<1x8xf32, #tpu.memory_space<vmem>>, vector<1x8xf32>
    %154 = vector.broadcast %153 : vector<1x8xf32> to vector<32x8xf32>
    %155 = arith.addf %152, %154 : vector<32x8xf32>
    %156 = arith.addf %149, %155 : vector<32x8xf32>
    %157 = vector.extract_strided_slice %156 {offsets = [0, 0], sizes = [16, 8], strides = [1, 1]} : vector<32x8xf32> to vector<16x8xf32>
    %c0_89 = arith.constant 0 : index
    %c0_90 = arith.constant 0 : index
    %c0_91 = arith.constant 0 : index
    %158 = vector.load %arg22[%c0_89, %c0_90, %c0_91] : memref<2x16x8xf32, #tpu.memory_space<vmem>>, vector<1x16x8xf32>
    %159 = vector.shape_cast %158 : vector<1x16x8xf32> to vector<16x8xf32>
    %160 = vector.shape_cast %157 : vector<16x8xf32> to vector<1x16x8xf32>
    tpu.vector_store %arg22[%c0_89, %c0_90, %c0_91], %160 {strides = array<i32>} : memref<2x16x8xf32, #tpu.memory_space<vmem>>, vector<1x16x8xf32>,
    %161 = vector.extract_strided_slice %156 {offsets = [16, 0], sizes = [16, 8], strides = [1, 1]} : vector<32x8xf32> to vector<16x8xf32>
    %c1_92 = arith.constant 1 : index
    %c0_93 = arith.constant 0 : index
    %c0_94 = arith.constant 0 : index
    %162 = vector.load %arg22[%c1_92, %c0_93, %c0_94] : memref<2x16x8xf32, #tpu.memory_space<vmem>>, vector<1x16x8xf32>
    %163 = vector.shape_cast %162 : vector<1x16x8xf32> to vector<16x8xf32>
    %164 = vector.shape_cast %161 : vector<16x8xf32> to vector<1x16x8xf32>
    tpu.vector_store %arg22[%c1_92, %c0_93, %c0_94], %164 {strides = array<i32>} : memref<2x16x8xf32, #tpu.memory_space<vmem>>, vector<1x16x8xf32>,
    return
  }
  func.func @transform_0(%arg0: i32) -> (i32, i32, i32) {
    %c0_i32 = arith.constant 0 : i32
    %c0_i32_0 = arith.constant 0 : i32
    %c0_i32_1 = arith.constant 0 : i32
    return %arg0, %c0_i32, %c0_i32_0 : i32, i32, i32
  }
  func.func @transform_1(%arg0: i32) -> (i32, i32) {
    %c0_i32 = arith.constant 0 : i32
    %c0_i32_0 = arith.constant 0 : i32
    %c0_i32_1 = arith.constant 0 : i32
    return %c0_i32, %c0_i32_0 : i32, i32
  }
  func.func @transform_2(%arg0: i32) -> (i32, i32) {
    %c0_i32 = arith.constant 0 : i32
    %c0_i32_0 = arith.constant 0 : i32
    %c0_i32_1 = arith.constant 0 : i32
    return %c0_i32, %c0_i32_0 : i32, i32
  }
  func.func @transform_3(%arg0: i32) -> (i32, i32) {
    %c0_i32 = arith.constant 0 : i32
    %c0_i32_0 = arith.constant 0 : i32
    %c0_i32_1 = arith.constant 0 : i32
    return %c0_i32, %c0_i32_0 : i32, i32
  }
  func.func @transform_4(%arg0: i32) -> (i32, i32) {
    %c0_i32 = arith.constant 0 : i32
    %c0_i32_0 = arith.constant 0 : i32
    %c0_i32_1 = arith.constant 0 : i32
    return %c0_i32, %c0_i32_0 : i32, i32
  }
  func.func @transform_5(%arg0: i32) -> (i32, i32) {
    %c0_i32 = arith.constant 0 : i32
    %c0_i32_0 = arith.constant 0 : i32
    %c0_i32_1 = arith.constant 0 : i32
    return %c0_i32, %c0_i32_0 : i32, i32
  }
  func.func @transform_6(%arg0: i32) -> (i32, i32) {
    %c0_i32 = arith.constant 0 : i32
    %c0_i32_0 = arith.constant 0 : i32
    %c0_i32_1 = arith.constant 0 : i32
    return %c0_i32, %c0_i32_0 : i32, i32
  }
  func.func @transform_7(%arg0: i32) -> (i32, i32) {
    %c0_i32 = arith.constant 0 : i32
    %c0_i32_0 = arith.constant 0 : i32
    %c0_i32_1 = arith.constant 0 : i32
    return %c0_i32, %c0_i32_0 : i32, i32
  }
  func.func @transform_8(%arg0: i32) -> (i32, i32) {
    %c0_i32 = arith.constant 0 : i32
    %c0_i32_0 = arith.constant 0 : i32
    %c0_i32_1 = arith.constant 0 : i32
    return %c0_i32, %c0_i32_0 : i32, i32
  }
  func.func @transform_9(%arg0: i32) -> (i32, i32) {
    %c0_i32 = arith.constant 0 : i32
    %c0_i32_0 = arith.constant 0 : i32
    %c0_i32_1 = arith.constant 0 : i32
    return %c0_i32, %c0_i32_0 : i32, i32
  }
  func.func @transform_10(%arg0: i32) -> (i32, i32) {
    %c0_i32 = arith.constant 0 : i32
    %c0_i32_0 = arith.constant 0 : i32
    %c0_i32_1 = arith.constant 0 : i32
    return %c0_i32, %c0_i32_0 : i32, i32
  }
  func.func @transform_11(%arg0: i32) -> (i32, i32) {
    %c0_i32 = arith.constant 0 : i32
    %c0_i32_0 = arith.constant 0 : i32
    %c0_i32_1 = arith.constant 0 : i32
    return %c0_i32, %c0_i32_0 : i32, i32
  }
  func.func @transform_12(%arg0: i32) -> (i32, i32) {
    %c0_i32 = arith.constant 0 : i32
    %c0_i32_0 = arith.constant 0 : i32
    %c0_i32_1 = arith.constant 0 : i32
    return %c0_i32, %c0_i32_0 : i32, i32
  }
  func.func @transform_13(%arg0: i32) -> (i32, i32) {
    %c0_i32 = arith.constant 0 : i32
    %c0_i32_0 = arith.constant 0 : i32
    %c0_i32_1 = arith.constant 0 : i32
    return %c0_i32, %c0_i32_0 : i32, i32
  }
  func.func @transform_14(%arg0: i32) -> (i32, i32) {
    %c0_i32 = arith.constant 0 : i32
    %c0_i32_0 = arith.constant 0 : i32
    %c0_i32_1 = arith.constant 0 : i32
    return %c0_i32, %c0_i32_0 : i32, i32
  }
  func.func @transform_15(%arg0: i32) -> (i32, i32) {
    %c0_i32 = arith.constant 0 : i32
    %c0_i32_0 = arith.constant 0 : i32
    %c0_i32_1 = arith.constant 0 : i32
    return %c0_i32, %c0_i32_0 : i32, i32
  }
  func.func @transform_16(%arg0: i32) -> (i32, i32) {
    %c0_i32 = arith.constant 0 : i32
    %c0_i32_0 = arith.constant 0 : i32
    %c0_i32_1 = arith.constant 0 : i32
    return %c0_i32, %c0_i32_0 : i32, i32
  }
  func.func @transform_17(%arg0: i32) -> (i32, i32) {
    %c0_i32 = arith.constant 0 : i32
    %c0_i32_0 = arith.constant 0 : i32
    %c0_i32_1 = arith.constant 0 : i32
    return %c0_i32, %c0_i32_0 : i32, i32
  }
  func.func @transform_18(%arg0: i32) -> (i32, i32) {
    %c0_i32 = arith.constant 0 : i32
    %c0_i32_0 = arith.constant 0 : i32
    %c0_i32_1 = arith.constant 0 : i32
    return %c0_i32, %c0_i32_0 : i32, i32
  }
  func.func @transform_19(%arg0: i32) -> (i32, i32) {
    %c0_i32 = arith.constant 0 : i32
    %c0_i32_0 = arith.constant 0 : i32
    %c0_i32_1 = arith.constant 0 : i32
    return %c0_i32, %c0_i32_0 : i32, i32
  }
  func.func @transform_20(%arg0: i32) -> (i32, i32) {
    %c0_i32 = arith.constant 0 : i32
    %c0_i32_0 = arith.constant 0 : i32
    %c0_i32_1 = arith.constant 0 : i32
    return %c0_i32, %c0_i32_0 : i32, i32
  }
  func.func @transform_21(%arg0: i32) -> (i32, i32, i32) {
    %c0_i32 = arith.constant 0 : i32
    %c0_i32_0 = arith.constant 0 : i32
    %c0_i32_1 = arith.constant 0 : i32
    return %arg0, %c0_i32, %c0_i32_0 : i32, i32, i32
  }
}

</mosaic_0001>

<bundles_post_ra>
// kernel: tpu_custom_call.1
= control target key start
LH: loop header
LB: loop body
LE: loop exit
PB: predicated region body
PF: predicated region fallthrough
CT: control target
= control target key end

     0   :  { %s3559_s0 = inlined_call_operand.hbm [shape: f32[2,16,8], index: 0, kind: input, shape index: {}]   ;;  %s3560_s1 = inlined_call_operand.hbm [shape: bf16[24,32], index: 1, kind: input, shape index: {}]   ;;  %s3561_s2 = inlined_call_operand.hbm [shape: f32[1,32], index: 2, kind: input, shape index: {}]   ;;  %s3562_s3 = inlined_call_operand.hbm [shape: bf16[96,16], index: 3, kind: input, shape index: {}]   ;;  %s3563_s4 = inlined_call_operand.hbm [shape: f32[1,16], index: 4, kind: input, shape index: {}]   ;;  %s3564_s5 = inlined_call_operand.hbm [shape: bf16[8,16], index: 5, kind: input, shape index: {}]   ;;  %s3565_s6 = inlined_call_operand.hbm [shape: f32[1,16], index: 6, kind: input, shape index: {}]   ;;  %s3566_s7 = inlined_call_operand.hbm [shape: bf16[48,32], index: 7, kind: input, shape index: {}]   ;;  %s3567_s8 = inlined_call_operand.hbm [shape: f32[1,32], index: 8, kind: input, shape index: {}]   ;;  %s3568_s9 = inlined_call_operand.hbm [shape: bf16[96,16], index: 9, kind: input, shape index: {}]   ;;  %s3569_s10 = inlined_call_operand.hbm [shape: f32[1,16], index: 10, kind: input, shape index: {}]   ;;  %s3570_s11 = inlined_call_operand.hbm [shape: bf16[48,32], index: 11, kind: input, shape index: {}]   ;;  %s3571_s12 = inlined_call_operand.hbm [shape: f32[1,32], index: 12, kind: input, shape index: {}]   ;;  %s3572_s13 = inlined_call_operand.hbm [shape: bf16[96,16], index: 13, kind: input, shape index: {}]   ;;  %s3573_s14 = inlined_call_operand.hbm [shape: f32[1,16], index: 14, kind: input, shape index: {}]   ;;  %s3574_s15 = inlined_call_operand.hbm [shape: bf16[48,32], index: 15, kind: input, shape index: {}]   ;;  %s3575_s16 = inlined_call_operand.hbm [shape: f32[1,32], index: 16, kind: input, shape index: {}]   ;;  %s3576_s17 = inlined_call_operand.hbm [shape: bf16[96,8], index: 17, kind: input, shape index: {}]   ;;  %s3577_s18 = inlined_call_operand.hbm [shape: f32[1,8], index: 18, kind: input, shape index: {}]   ;;  %s3578_s19 = inlined_call_operand.hbm [shape: bf16[16,8], index: 19, kind: input, shape index: {}]   ;;  %s3579_s20 = inlined_call_operand.hbm [shape: f32[1,8], index: 20, kind: input, shape index: {}]   ;;  %s3580_s21 = inlined_call_operand.hbm [shape: f32[2,16,8], index: 21, kind: output, shape index: {}]  }
   0x1   :  { %3590 = sst [smem:[#allocation48_spill]] %s3559_s0 }
   0x2   :  { %3591 = sst [smem:[#allocation49_spill]] %s3560_s1 }
   0x3   :  { %3592 = sst [smem:[#allocation50_spill]] %s3561_s2 }
   0x4   :  { %3593 = sst [smem:[#allocation51_spill]] %s3562_s3 }
   0x5   :  { %3594 = sst [smem:[#allocation52_spill]] %s3563_s4 }
   0x6   :  { %3595 = sst [smem:[#allocation53_spill]] %s3564_s5 }
   0x7   :  { %3596 = sst [smem:[#allocation54_spill]] %s3577_s18 }
   0x8   :  { %3597 = sst [smem:[#allocation55_spill]] %s3579_s20 }
   0x9   :  { %3598 = sst [smem:[#allocation56_spill]] %s3580_s21 }
   0xa   :  { %26 = vsyncpa [#allocation3], 0 }
   0xb   :  { %27 = vsyncpa [#allocation6], 0 }
   0xc   :  { %28 = vsyncpa [#allocation9], 0 }
   0xd   :  { %29 = vsyncpa [#allocation12], 0 }
   0xe   :  { %30 = vsyncpa [#allocation15], 0 }
   0xf   :  { %31 = vsyncpa [#allocation18], 0 }
  0x10   :  { %32 = vsyncpa [#allocation21], 0 }
  0x11   :  { %33 = vsyncpa [#allocation24], 0 }
  0x12   :  { %34 = vsyncpa [#allocation27], 0 }
  0x13   :  { %35 = vsyncpa [#allocation30], 0 }
  0x14   :  { %36 = vsyncpa [#allocation33], 0 }
  0x15   :  { %37 = vsyncpa [#allocation4], 0  ;;  %s2781_s2 = smov [#allocation5]   ;;  %s3599_s3 = sld [smem:[#allocation49_spill]] }
  0x16   :  { %s55_s25 = sshll.u32 %s2781_s2, 4  ;;  %s56_s25 = int_to_ptr.vmem [resolvable:$true] %s55_s25 }
  0x1b   :  { %s2273_s28 = scalar_lea.hbm %s3599_s3, 192 }
  0x1c   :  { %p2274_p0 = scmp.ne.s32.totalorder %s3599_s3, %s2273_s28  ;;  %p2277_p1 = scmp.lt.u32.totalorder %s2273_s28, %s3599_s3 }
  0x1e   :  { %p2279_p2 = pnand %p2277_p1, %p2274_p0 }
  0x20   :  { %2282 = shalt.err (!%p2279_p2)
}
  0x21   :  { %s2283_s5 = scalar_lea.vmem %s56_s25, 192  ;;  %p2288_p4 = scmp.lt.s32.totalorder %s56_s25, %s56_s25 }
  0x22   :  { %p2284_p3 = scmp.ne.s32.totalorder %s56_s25, %s2283_s5  ;;  %p2289_p5 = scmp.lt.s32.totalorder %s2283_s5, %s2283_s5 }
  0x24   :  { %p2290_p6 = por %p2289_p5, %p2288_p4 }
  0x26   :  { %p2291_p7 = pnand %p2290_p6, %p2284_p3 }
  0x28   :  { %2294 = shalt.err (!%p2291_p7)
}
  0x29   :  { %s2782_s22 = smov 64   ;;  %s2783_s23 = smov 4  }
  0x2a   :  { %61 = dma.hbm_to_vmem [thread:$0]  %s3599_s3, 192, %s56_s25, [#allocation6], %s2782_s22, %s2782_s22, %s2783_s23  }
  0x2b   :  { %s2784_s2 = smov [#allocation8]   ;;  %s2785_s27 = smov [#allocation11]  }
  0x2c   :  { %s77_s26 = sshll.u32 %s2784_s2, 4  ;;  %s100_s28 = sshll.u32 %s2785_s27, 4  ;;  %s78_s26 = int_to_ptr.vmem [resolvable:$true] %s77_s26  ;;  %s101_s28 = int_to_ptr.vmem [resolvable:$true] %s100_s28 }
  0x2d   :  { %s3600_s4 = sld [smem:[#allocation51_spill]] }
  0x33   :  { %s2295_s30 = scalar_lea.hbm %s3600_s4, 768 }
  0x34   :  { %p2296_p8 = scmp.ne.s32.totalorder %s3600_s4, %s2295_s30  ;;  %p2299_p9 = scmp.lt.u32.totalorder %s2295_s30, %s3600_s4 }
  0x36   :  { %p2301_p10 = pnand %p2299_p9, %p2296_p8 }
  0x38   :  { %2304 = shalt.err (!%p2301_p10)
}
  0x39   :  { %s2305_s25 = scalar_lea.vmem %s78_s26, 768  ;;  %p2310_p12 = scmp.lt.s32.totalorder %s78_s26, %s78_s26 }
  0x3a   :  { %p2306_p11 = scmp.ne.s32.totalorder %s78_s26, %s2305_s25  ;;  %p2311_p13 = scmp.lt.s32.totalorder %s2305_s25, %s2305_s25 }
  0x3c   :  { %p2312_p0 = por %p2311_p13, %p2310_p12 }
  0x3e   :  { %p2313_p1 = pnand %p2312_p0, %p2306_p11 }
  0x40   :  { %2316 = shalt.err (!%p2313_p1)
}
  0x41   :  { %83 = dma.hbm_to_vmem [thread:$0]  %s3600_s4, 768, %s78_s26, [#allocation9], %s2782_s22, %s2782_s22, %s2783_s23  }
  0x42   :  { %s3601_s20 = sld [smem:[#allocation53_spill]] }
  0x48   :  { %s2317_s24 = scalar_lea.hbm %s3601_s20, 64 }
  0x49   :  { %p2318_p2 = scmp.ne.s32.totalorder %s3601_s20, %s2317_s24  ;;  %p2321_p3 = scmp.lt.u32.totalorder %s2317_s24, %s3601_s20 }
  0x4b   :  { %p2323_p4 = pnand %p2321_p3, %p2318_p2 }
  0x4d   :  { %2326 = shalt.err (!%p2323_p4)
}
  0x4e   :  { %s2327_s30 = scalar_lea.vmem %s101_s28, 64  ;;  %p2332_p6 = scmp.lt.s32.totalorder %s101_s28, %s101_s28 }
  0x4f   :  { %p2328_p5 = scmp.ne.s32.totalorder %s101_s28, %s2327_s30  ;;  %p2333_p7 = scmp.lt.s32.totalorder %s2327_s30, %s2327_s30 }
  0x51   :  { %p2334_p8 = por %p2333_p7, %p2332_p6 }
  0x53   :  { %p2335_p9 = pnand %p2334_p8, %p2328_p5 }
  0x55   :  { %2338 = shalt.err (!%p2335_p9)
}
  0x56   :  { %103 = dma.hbm_to_vmem [thread:$0]  %s3601_s20, 64, %s101_s28, [#allocation12]  }
  0x57   :  { %s2786_s5 = smov [#allocation14]   ;;  %s2787_s3 = smov [#allocation17]  }
  0x58   :  { %s119_s25 = sshll.u32 %s2786_s5, 4  ;;  %s141_s1 = sshll.u32 %s2787_s3, 4  ;;  %s120_s25 = int_to_ptr.vmem [resolvable:$true] %s119_s25  ;;  %s142_s1 = int_to_ptr.vmem [resolvable:$true] %s141_s1 }
  0x59   :  { %s2339_s24 = scalar_lea.hbm %s3566_s7, 384 }
  0x5a   :  { %p2340_p10 = scmp.ne.s32.totalorder %s3566_s7, %s2339_s24  ;;  %p2343_p11 = scmp.lt.u32.totalorder %s2339_s24, %s3566_s7 }
  0x5c   :  { %p2345_p12 = pnand %p2343_p11, %p2340_p10 }
  0x5e   :  { %2348 = shalt.err (!%p2345_p12)
}
  0x5f   :  { %s2349_s28 = scalar_lea.vmem %s120_s25, 384  ;;  %p2354_p0 = scmp.lt.s32.totalorder %s120_s25, %s120_s25 }
  0x60   :  { %p2350_p13 = scmp.ne.s32.totalorder %s120_s25, %s2349_s28  ;;  %p2355_p1 = scmp.lt.s32.totalorder %s2349_s28, %s2349_s28 }
  0x62   :  { %p2356_p2 = por %p2355_p1, %p2354_p0 }
  0x64   :  { %p2357_p3 = pnand %p2356_p2, %p2350_p13 }
  0x66   :  { %2360 = shalt.err (!%p2357_p3)
}
  0x67   :  { %125 = dma.hbm_to_vmem [thread:$0]  %s3566_s7, 384, %s120_s25, [#allocation15], %s2782_s22, %s2782_s22, %s2783_s23  }
  0x68   :  { %s2361_s5 = scalar_lea.hbm %s3568_s9, 768 }
  0x69   :  { %p2362_p4 = scmp.ne.s32.totalorder %s3568_s9, %s2361_s5  ;;  %p2365_p5 = scmp.lt.u32.totalorder %s2361_s5, %s3568_s9 }
  0x6b   :  { %p2367_p6 = pnand %p2365_p5, %p2362_p4 }
  0x6d   :  { %2370 = shalt.err (!%p2367_p6)
}
  0x6e   :  { %s2371_s2 = scalar_lea.vmem %s142_s1, 768  ;;  %p2376_p8 = scmp.lt.s32.totalorder %s142_s1, %s142_s1 }
  0x6f   :  { %p2372_p7 = scmp.ne.s32.totalorder %s142_s1, %s2371_s2  ;;  %p2377_p9 = scmp.lt.s32.totalorder %s2371_s2, %s2371_s2 }
  0x71   :  { %p2378_p10 = por %p2377_p9, %p2376_p8 }
  0x73   :  { %p2379_p11 = pnand %p2378_p10, %p2372_p7 }
  0x75   :  { %2382 = shalt.err (!%p2379_p11)
}
  0x76   :  { %147 = dma.hbm_to_vmem [thread:$0]  %s3568_s9, 768, %s142_s1, [#allocation18], %s2782_s22, %s2782_s22, %s2783_s23  }
  0x77   :  { %s2788_s27 = smov [#allocation20]   ;;  %s2789_s0 = smov [#allocation23]  }
  0x78   :  { %s163_s29 = sshll.u32 %s2788_s27, 4  ;;  %s185_s28 = sshll.u32 %s2789_s0, 4  ;;  %s164_s29 = int_to_ptr.vmem [resolvable:$true] %s163_s29  ;;  %s186_s28 = int_to_ptr.vmem [resolvable:$true] %s185_s28 }
  0x79   :  { %s2383_s26 = scalar_lea.hbm %s3570_s11, 384 }
  0x7a   :  { %p2384_p12 = scmp.ne.s32.totalorder %s3570_s11, %s2383_s26  ;;  %p2387_p13 = scmp.lt.u32.totalorder %s2383_s26, %s3570_s11 }
  0x7c   :  { %p2389_p0 = pnand %p2387_p13, %p2384_p12 }
  0x7e   :  { %2392 = shalt.err (!%p2389_p0)
}
  0x7f   :  { %s2393_s9 = scalar_lea.vmem %s164_s29, 384  ;;  %p2398_p2 = scmp.lt.s32.totalorder %s164_s29, %s164_s29 }
  0x80   :  { %p2394_p1 = scmp.ne.s32.totalorder %s164_s29, %s2393_s9  ;;  %p2399_p3 = scmp.lt.s32.totalorder %s2393_s9, %s2393_s9 }
  0x82   :  { %p2400_p4 = por %p2399_p3, %p2398_p2 }
  0x84   :  { %p2401_p5 = pnand %p2400_p4, %p2394_p1 }
  0x86   :  { %2404 = shalt.err (!%p2401_p5)
}
  0x87   :  { %169 = dma.hbm_to_vmem [thread:$0]  %s3570_s11, 384, %s164_s29, [#allocation21], %s2782_s22, %s2782_s22, %s2783_s23  }
  0x88   :  { %s2405_s7 = scalar_lea.hbm %s3572_s13, 768 }
  0x89   :  { %p2406_p6 = scmp.ne.s32.totalorder %s3572_s13, %s2405_s7  ;;  %p2409_p7 = scmp.lt.u32.totalorder %s2405_s7, %s3572_s13 }
  0x8b   :  { %p2411_p8 = pnand %p2409_p7, %p2406_p6 }
  0x8d   :  { %2414 = shalt.err (!%p2411_p8)
}
  0x8e   :  { %s2415_s30 = scalar_lea.vmem %s186_s28, 768  ;;  %p2420_p10 = scmp.lt.s32.totalorder %s186_s28, %s186_s28 }
  0x8f   :  { %p2416_p9 = scmp.ne.s32.totalorder %s186_s28, %s2415_s30  ;;  %p2421_p11 = scmp.lt.s32.totalorder %s2415_s30, %s2415_s30 }
  0x91   :  { %p2422_p12 = por %p2421_p11, %p2420_p10 }
  0x93   :  { %p2423_p13 = pnand %p2422_p12, %p2416_p9 }
  0x95   :  { %2426 = shalt.err (!%p2423_p13)
}
  0x96   :  { %191 = dma.hbm_to_vmem [thread:$0]  %s3572_s13, 768, %s186_s28, [#allocation24], %s2782_s22, %s2782_s22, %s2783_s23  }
  0x97   :  { %s2790_s26 = smov [#allocation26]   ;;  %s2791_s5 = smov [#allocation29]  }
  0x98   :  { %s207_s4 = sshll.u32 %s2790_s26, 4  ;;  %s229_s3 = sshll.u32 %s2791_s5, 4  ;;  %s208_s4 = int_to_ptr.vmem [resolvable:$true] %s207_s4  ;;  %s230_s3 = int_to_ptr.vmem [resolvable:$true] %s229_s3 }
  0x99   :  { %s2427_s1 = scalar_lea.hbm %s3574_s15, 384 }
  0x9a   :  { %p2428_p0 = scmp.ne.s32.totalorder %s3574_s15, %s2427_s1  ;;  %p2431_p1 = scmp.lt.u32.totalorder %s2427_s1, %s3574_s15 }
  0x9c   :  { %p2433_p2 = pnand %p2431_p1, %p2428_p0 }
  0x9e   :  { %2436 = shalt.err (!%p2433_p2)
}
  0x9f   :  { %s2437_s13 = scalar_lea.vmem %s208_s4, 384  ;;  %p2442_p4 = scmp.lt.s32.totalorder %s208_s4, %s208_s4 }
  0xa0   :  { %p2438_p3 = scmp.ne.s32.totalorder %s208_s4, %s2437_s13  ;;  %p2443_p5 = scmp.lt.s32.totalorder %s2437_s13, %s2437_s13 }
  0xa2   :  { %p2444_p6 = por %p2443_p5, %p2442_p4 }
  0xa4   :  { %p2445_p7 = pnand %p2444_p6, %p2438_p3 }
  0xa6   :  { %2448 = shalt.err (!%p2445_p7)
}
  0xa7   :  { %213 = dma.hbm_to_vmem [thread:$0]  %s3574_s15, 384, %s208_s4, [#allocation27], %s2782_s22, %s2782_s22, %s2783_s23  }
  0xa8   :  { %s2449_s20 = scalar_lea.hbm %s3576_s17, 768 }
  0xa9   :  { %p2450_p8 = scmp.ne.s32.totalorder %s3576_s17, %s2449_s20  ;;  %p2453_p9 = scmp.lt.u32.totalorder %s2449_s20, %s3576_s17 }
  0xab   :  { %p2455_p10 = pnand %p2453_p9, %p2450_p8 }
  0xad   :  { %2458 = shalt.err (!%p2455_p10)
}
  0xae   :  { %s2459_s5 = scalar_lea.vmem %s230_s3, 768  ;;  %p2464_p12 = scmp.lt.s32.totalorder %s230_s3, %s230_s3 }
  0xaf   :  { %p2460_p11 = scmp.ne.s32.totalorder %s230_s3, %s2459_s5  ;;  %p2465_p13 = scmp.lt.s32.totalorder %s2459_s5, %s2459_s5 }
  0xb1   :  { %p2466_p0 = por %p2465_p13, %p2464_p12 }
  0xb3   :  { %p2467_p1 = pnand %p2466_p0, %p2460_p11 }
  0xb5   :  { %2470 = shalt.err (!%p2467_p1)
}
  0xb6   :  { %235 = dma.hbm_to_vmem [thread:$0]  %s3576_s17, 768, %s230_s3, [#allocation30], %s2782_s22, %s2782_s22, %s2783_s23  }
  0xb7   :  { %s2792_s21 = smov [#allocation32]   ;;  %s2793_s1 = smov [#allocation2]  }
  0xb8   :  { %s251_s9 = sshll.u32 %s2792_s21, 4  ;;  %s43_s18 = sshll.u32 %s2793_s1, 4  ;;  %s252_s9 = int_to_ptr.vmem [resolvable:$true] %s251_s9  ;;  %s44_s18 = int_to_ptr.vmem [resolvable:$true] %s43_s18 }
  0xb9   :  { %s2471_s7 = scalar_lea.hbm %s3578_s19, 128 }
  0xba   :  { %p2472_p2 = scmp.ne.s32.totalorder %s3578_s19, %s2471_s7  ;;  %p2475_p3 = scmp.lt.u32.totalorder %s2471_s7, %s3578_s19 }
  0xbc   :  { %p2477_p4 = pnand %p2475_p3, %p2472_p2 }
  0xbe   :  { %2480 = shalt.err (!%p2477_p4)
}
  0xbf   :  { %s2481_s17 = scalar_lea.vmem %s252_s9, 128  ;;  %p2486_p6 = scmp.lt.s32.totalorder %s252_s9, %s252_s9 }
  0xc0   :  { %p2482_p5 = scmp.ne.s32.totalorder %s252_s9, %s2481_s17  ;;  %p2487_p7 = scmp.lt.s32.totalorder %s2481_s17, %s2481_s17 }
  0xc2   :  { %p2488_p8 = por %p2487_p7, %p2486_p6 }
  0xc4   :  { %p2489_p9 = pnand %p2488_p8, %p2482_p5 }
  0xc6   :  { %2492 = shalt.err (!%p2489_p9)
}
  0xc7   :  { %257 = dma.hbm_to_vmem [thread:$0]  %s3578_s19, 128, %s252_s9, [#allocation33], %s2782_s22, %s2782_s22, %s2783_s23  }
  0xc8   :  { %s3602_s11 = sld [smem:[#allocation48_spill]] }
  0xce   :  { %s2493_s29 = scalar_lea.hbm %s3602_s11, 512 }
  0xcf   :  { %p2494_p10 = scmp.ne.s32.totalorder %s3602_s11, %s2493_s29  ;;  %p2497_p11 = scmp.lt.u32.totalorder %s2493_s29, %s3602_s11 }
  0xd1   :  { %p2499_p12 = pnand %p2497_p11, %p2494_p10 }
  0xd3   :  { %2502 = shalt.err (!%p2499_p12)
}
  0xd4   :  { %s2503_s21 = scalar_lea.vmem %s44_s18, 512  ;;  %p2508_p0 = scmp.lt.s32.totalorder %s44_s18, %s44_s18 }
  0xd5   :  { %p2504_p13 = scmp.ne.s32.totalorder %s44_s18, %s2503_s21  ;;  %p2509_p1 = scmp.lt.s32.totalorder %s2503_s21, %s2503_s21 }
  0xd7   :  { %p2510_p2 = por %p2509_p1, %p2508_p0 }
  0xd9   :  { %p2511_p3 = pnand %p2510_p2, %p2504_p13 }
  0xdb   :  { %2514 = shalt.err (!%p2511_p3)
}
  0xdc   :  { %s2794_s19 = smov 128   ;;  %s2795_s23 = smov 8  }
  0xdd   :  { %49 = dma.hbm_to_vmem [thread:$0]  %s3602_s11, 512, %s44_s18, [#allocation3], %s2794_s19, %s2794_s19, %s2795_s23  }
  0xde   :  { %s2796_s24 = smov [#allocation7]   ;;  %s2797_s7 = smov [#allocation10]  }
  0xdf   :  { %s68_s2 = sshll.u32 %s2796_s24, 4  ;;  %s90_s13 = sshll.u32 %s2797_s7, 4  ;;  %s69_s2 = int_to_ptr.vmem [resolvable:$true] %s68_s2  ;;  %s91_s13 = int_to_ptr.vmem [resolvable:$true] %s90_s13 }
  0xe0   :  { %s3603_s27 = sld [smem:[#allocation50_spill]] }
  0xe6   :  { %s2515_s17 = scalar_lea.hbm %s3603_s27, 16 }
  0xe7   :  { %p2516_p4 = scmp.ne.s32.totalorder %s3603_s27, %s2515_s17  ;;  %p2519_p5 = scmp.lt.u32.totalorder %s2515_s17, %s3603_s27 }
  0xe9   :  { %p2521_p6 = pnand %p2519_p5, %p2516_p4 }
  0xeb   :  { %2524 = shalt.err (!%p2521_p6)
}
  0xec   :  { %s2525_s18 = scalar_lea.vmem %s69_s2, 16  ;;  %s2529_s11 = scalar_lea.vmem %s69_s2, 32 }
  0xed   :  { %p2526_p7 = scmp.ne.s32.totalorder %s69_s2, %s2525_s18  ;;  %p2530_p8 = scmp.lt.s32.totalorder %s69_s2, %s69_s2 }
  0xee   :  { %p2531_p9 = scmp.lt.s32.totalorder %s2529_s11, %s2525_s18 }
  0xf0   :  { %p2532_p10 = por %p2531_p9, %p2530_p8 }
  0xf2   :  { %p2533_p11 = pnand %p2532_p10, %p2526_p7 }
  0xf4   :  { %2536 = shalt.err (!%p2533_p11)
}
  0xf5   :  { %71 = dma.hbm_to_vmem [thread:$0]  %s3603_s27, 16, %s69_s2, [#allocation6]  }
  0xf6   :  { %s3604_s4 = sld [smem:[#allocation52_spill]] }
  0xfc   :  { %s2537_s21 = scalar_lea.hbm %s3604_s4, 16 }
  0xfd   :  { %p2538_p12 = scmp.ne.s32.totalorder %s3604_s4, %s2537_s21  ;;  %p2541_p13 = scmp.lt.u32.totalorder %s2537_s21, %s3604_s4 }
  0xff   :  { %p2543_p0 = pnand %p2541_p13, %p2538_p12 }
 0x101   :  { %2546 = shalt.err (!%p2543_p0)
}
 0x102   :  { %s2547_s28 = scalar_lea.vmem %s91_s13, 16  ;;  %s2551_s25 = scalar_lea.vmem %s91_s13, 32 }
 0x103   :  { %p2548_p1 = scmp.ne.s32.totalorder %s91_s13, %s2547_s28  ;;  %p2552_p2 = scmp.lt.s32.totalorder %s91_s13, %s91_s13 }
 0x104   :  { %p2553_p3 = scmp.lt.s32.totalorder %s2551_s25, %s2547_s28 }
 0x106   :  { %p2554_p4 = por %p2553_p3, %p2552_p2 }
 0x108   :  { %p2555_p5 = pnand %p2554_p4, %p2548_p1 }
 0x10a   :  { %2558 = shalt.err (!%p2555_p5)
}
 0x10b   :  { %93 = dma.hbm_to_vmem [thread:$0]  %s3604_s4, 16, %s91_s13, [#allocation9]  }
 0x10c   :  { %s2798_s17 = smov [#allocation13]   ;;  %s2799_s0 = smov [#allocation16]  }
 0x10d   :  { %s110_s3 = sshll.u32 %s2798_s17, 4  ;;  %s132_s20 = sshll.u32 %s2799_s0, 4  ;;  %s111_s3 = int_to_ptr.vmem [resolvable:$true] %s110_s3  ;;  %s133_s20 = int_to_ptr.vmem [resolvable:$true] %s132_s20 }
 0x10e   :  { %s2559_s11 = scalar_lea.hbm %s3565_s6, 16 }
 0x10f   :  { %p2560_p6 = scmp.ne.s32.totalorder %s3565_s6, %s2559_s11  ;;  %p2563_p7 = scmp.lt.u32.totalorder %s2559_s11, %s3565_s6 }
 0x111   :  { %p2565_p8 = pnand %p2563_p7, %p2560_p6 }
 0x113   :  { %2568 = shalt.err (!%p2565_p8)
}
 0x114   :  { %s2569_s13 = scalar_lea.vmem %s111_s3, 16  ;;  %s2573_s4 = scalar_lea.vmem %s111_s3, 32 }
 0x115   :  { %p2570_p9 = scmp.ne.s32.totalorder %s111_s3, %s2569_s13  ;;  %p2574_p10 = scmp.lt.s32.totalorder %s111_s3, %s111_s3 }
 0x116   :  { %p2575_p11 = scmp.lt.s32.totalorder %s2573_s4, %s2569_s13 }
 0x118   :  { %p2576_p12 = por %p2575_p11, %p2574_p10 }
 0x11a   :  { %p2577_p13 = pnand %p2576_p12, %p2570_p9 }
 0x11c   :  { %2580 = shalt.err (!%p2577_p13)
}
 0x11d   :  { %113 = dma.hbm_to_vmem [thread:$0]  %s3565_s6, 16, %s111_s3, [#allocation12]  }
 0x11e   :  { %s2581_s7 = scalar_lea.hbm %s3567_s8, 16 }
 0x11f   :  { %p2582_p0 = scmp.ne.s32.totalorder %s3567_s8, %s2581_s7  ;;  %p2585_p1 = scmp.lt.u32.totalorder %s2581_s7, %s3567_s8 }
 0x121   :  { %p2587_p2 = pnand %p2585_p1, %p2582_p0 }
 0x123   :  { %2590 = shalt.err (!%p2587_p2)
}
 0x124   :  { %s2591_s17 = scalar_lea.vmem %s133_s20, 16  ;;  %s2595_s0 = scalar_lea.vmem %s133_s20, 32 }
 0x125   :  { %p2592_p3 = scmp.ne.s32.totalorder %s133_s20, %s2591_s17  ;;  %p2596_p4 = scmp.lt.s32.totalorder %s133_s20, %s133_s20 }
 0x126   :  { %p2597_p5 = scmp.lt.s32.totalorder %s2595_s0, %s2591_s17 }
 0x128   :  { %p2598_p6 = por %p2597_p5, %p2596_p4 }
 0x12a   :  { %p2599_p7 = pnand %p2598_p6, %p2592_p3 }
 0x12c   :  { %2602 = shalt.err (!%p2599_p7)
}
 0x12d   :  { %135 = dma.hbm_to_vmem [thread:$0]  %s3567_s8, 16, %s133_s20, [#allocation15]  }
 0x12e   :  { %s2800_s30 = smov [#allocation19]   ;;  %s2801_s11 = smov [#allocation22]  }
 0x12f   :  { %s154_s18 = sshll.u32 %s2800_s30, 4  ;;  %s176_s29 = sshll.u32 %s2801_s11, 4  ;;  %s155_s18 = int_to_ptr.vmem [resolvable:$true] %s154_s18  ;;  %s177_s29 = int_to_ptr.vmem [resolvable:$true] %s176_s29 }
 0x130   :  { %s2603_s15 = scalar_lea.hbm %s3569_s10, 16 }
 0x131   :  { %p2604_p8 = scmp.ne.s32.totalorder %s3569_s10, %s2603_s15  ;;  %p2607_p9 = scmp.lt.u32.totalorder %s2603_s15, %s3569_s10 }
 0x133   :  { %p2609_p10 = pnand %p2607_p9, %p2604_p8 }
 0x135   :  { %2612 = shalt.err (!%p2609_p10)
}
 0x136   :  { %s2613_s8 = scalar_lea.vmem %s155_s18, 16  ;;  %s2617_s20 = scalar_lea.vmem %s155_s18, 32 }
 0x137   :  { %p2614_p11 = scmp.ne.s32.totalorder %s155_s18, %s2613_s8  ;;  %p2618_p12 = scmp.lt.s32.totalorder %s155_s18, %s155_s18 }
 0x138   :  { %p2619_p13 = scmp.lt.s32.totalorder %s2617_s20, %s2613_s8 }
 0x13a   :  { %p2620_p0 = por %p2619_p13, %p2618_p12 }
 0x13c   :  { %p2621_p1 = pnand %p2620_p0, %p2614_p11 }
 0x13e   :  { %2624 = shalt.err (!%p2621_p1)
}
 0x13f   :  { %157 = dma.hbm_to_vmem [thread:$0]  %s3569_s10, 16, %s155_s18, [#allocation18]  }
 0x140   :  { %s2625_s25 = scalar_lea.hbm %s3571_s12, 16 }
 0x141   :  { %p2626_p2 = scmp.ne.s32.totalorder %s3571_s12, %s2625_s25  ;;  %p2629_p3 = scmp.lt.u32.totalorder %s2625_s25, %s3571_s12 }
 0x143   :  { %p2631_p4 = pnand %p2629_p3, %p2626_p2 }
 0x145   :  { %2634 = shalt.err (!%p2631_p4)
}
 0x146   :  { %s2635_s6 = scalar_lea.vmem %s177_s29, 16  ;;  %s2639_s3 = scalar_lea.vmem %s177_s29, 32 }
 0x147   :  { %p2636_p5 = scmp.ne.s32.totalorder %s177_s29, %s2635_s6  ;;  %p2640_p6 = scmp.lt.s32.totalorder %s177_s29, %s177_s29 }
 0x148   :  { %p2641_p7 = scmp.lt.s32.totalorder %s2639_s3, %s2635_s6 }
 0x14a   :  { %p2642_p8 = por %p2641_p7, %p2640_p6 }
 0x14c   :  { %p2643_p9 = pnand %p2642_p8, %p2636_p5 }
 0x14e   :  { %2646 = shalt.err (!%p2643_p9)
}
 0x14f   :  { %179 = dma.hbm_to_vmem [thread:$0]  %s3571_s12, 16, %s177_s29, [#allocation21]  }
 0x150   :  { %s2802_s18 = smov [#allocation25]   ;;  %s2803_s26 = smov [#allocation28]  }
 0x151   :  { %s198_s11 = sshll.u32 %s2802_s18, 4  ;;  %s220_s5 = sshll.u32 %s2803_s26, 4  ;;  %s199_s11 = int_to_ptr.vmem [resolvable:$true] %s198_s11  ;;  %s221_s5 = int_to_ptr.vmem [resolvable:$true] %s220_s5 }
 0x152   :  { %s2647_s4 = scalar_lea.hbm %s3573_s14, 16 }
 0x153   :  { %p2648_p10 = scmp.ne.s32.totalorder %s3573_s14, %s2647_s4  ;;  %p2651_p11 = scmp.lt.u32.totalorder %s2647_s4, %s3573_s14 }
 0x155   :  { %p2653_p12 = pnand %p2651_p11, %p2648_p10 }
 0x157   :  { %2656 = shalt.err (!%p2653_p12)
}
 0x158   :  { %s2657_s12 = scalar_lea.vmem %s199_s11, 16  ;;  %s2661_s29 = scalar_lea.vmem %s199_s11, 32 }
 0x159   :  { %p2658_p13 = scmp.ne.s32.totalorder %s199_s11, %s2657_s12  ;;  %p2662_p0 = scmp.lt.s32.totalorder %s199_s11, %s199_s11 }
 0x15a   :  { %p2663_p1 = scmp.lt.s32.totalorder %s2661_s29, %s2657_s12 }
 0x15c   :  { %p2664_p2 = por %p2663_p1, %p2662_p0 }
 0x15e   :  { %p2665_p3 = pnand %p2664_p2, %p2658_p13 }
 0x160   :  { %2668 = shalt.err (!%p2665_p3)
}
 0x161   :  { %201 = dma.hbm_to_vmem [thread:$0]  %s3573_s14, 16, %s199_s11, [#allocation24]  }
 0x162   :  { %s2669_s25 = scalar_lea.hbm %s3575_s16, 16 }
 0x163   :  { %p2670_p4 = scmp.ne.s32.totalorder %s3575_s16, %s2669_s25  ;;  %p2673_p5 = scmp.lt.u32.totalorder %s2669_s25, %s3575_s16 }
 0x165   :  { %p2675_p6 = pnand %p2673_p5, %p2670_p4 }
 0x167   :  { %2678 = shalt.err (!%p2675_p6)
}
 0x168   :  { %s2679_s6 = scalar_lea.vmem %s221_s5, 16  ;;  %s2683_s3 = scalar_lea.vmem %s221_s5, 32 }
 0x169   :  { %p2680_p7 = scmp.ne.s32.totalorder %s221_s5, %s2679_s6  ;;  %p2684_p8 = scmp.lt.s32.totalorder %s221_s5, %s221_s5 }
 0x16a   :  { %p2685_p9 = scmp.lt.s32.totalorder %s2683_s3, %s2679_s6 }
 0x16c   :  { %p2686_p10 = por %p2685_p9, %p2684_p8 }
 0x16e   :  { %p2687_p11 = pnand %p2686_p10, %p2680_p7 }
 0x170   :  { %2690 = shalt.err (!%p2687_p11)
}
 0x171   :  { %223 = dma.hbm_to_vmem [thread:$0]  %s3575_s16, 16, %s221_s5, [#allocation27]  }
 0x172   :  { %s2804_s30 = smov [#allocation31]   ;;  %s2805_s11 = smov [#allocation34]  }
 0x173   :  { %s242_s18 = sshll.u32 %s2804_s30, 4  ;;  %s264_s26 = sshll.u32 %s2805_s11, 4  ;;  %s243_s18 = int_to_ptr.vmem [resolvable:$true] %s242_s18  ;;  %s265_s26 = int_to_ptr.vmem [resolvable:$true] %s264_s26 }
 0x174   :  { %s3605_s4 = sld [smem:[#allocation54_spill]] }
 0x17a   :  { %s2691_s21 = scalar_lea.hbm %s3605_s4, 16 }
 0x17b   :  { %p2692_p12 = scmp.ne.s32.totalorder %s3605_s4, %s2691_s21  ;;  %p2695_p13 = scmp.lt.u32.totalorder %s2691_s21, %s3605_s4 }
 0x17d   :  { %p2697_p0 = pnand %p2695_p13, %p2692_p12 }
 0x17f   :  { %2700 = shalt.err (!%p2697_p0)
}
 0x180   :  { %s2701_s16 = scalar_lea.vmem %s243_s18, 16  ;;  %s2705_s5 = scalar_lea.vmem %s243_s18, 32 }
 0x181   :  { %p2702_p1 = scmp.ne.s32.totalorder %s243_s18, %s2701_s16  ;;  %p2706_p2 = scmp.lt.s32.totalorder %s243_s18, %s243_s18 }
 0x182   :  { %p2707_p3 = scmp.lt.s32.totalorder %s2705_s5, %s2701_s16 }
 0x184   :  { %p2708_p4 = por %p2707_p3, %p2706_p2 }
 0x186   :  { %p2709_p5 = pnand %p2708_p4, %p2702_p1 }
 0x188   :  { %2712 = shalt.err (!%p2709_p5)
}
 0x189   :  { %245 = dma.hbm_to_vmem [thread:$0]  %s3605_s4, 16, %s243_s18, [#allocation30]  }
 0x18a   :  { %s3606_s28 = sld [smem:[#allocation55_spill]] }
 0x190   :  { %s2713_s25 = scalar_lea.hbm %s3606_s28, 16 }
 0x191   :  { %p2714_p6 = scmp.ne.s32.totalorder %s3606_s28, %s2713_s25  ;;  %p2717_p7 = scmp.lt.u32.totalorder %s2713_s25, %s3606_s28 }
 0x193   :  { %p2719_p8 = pnand %p2717_p7, %p2714_p6 }
 0x195   :  { %2722 = shalt.err (!%p2719_p8)
}
 0x196   :  { %s2723_s6 = scalar_lea.vmem %s265_s26, 16  ;;  %s2727_s3 = scalar_lea.vmem %s265_s26, 32 }
 0x197   :  { %p2724_p9 = scmp.ne.s32.totalorder %s265_s26, %s2723_s6  ;;  %p2728_p10 = scmp.lt.s32.totalorder %s265_s26, %s265_s26 }
 0x198   :  { %p2729_p11 = scmp.lt.s32.totalorder %s2727_s3, %s2723_s6 }
 0x19a   :  { %p2730_p12 = por %p2729_p11, %p2728_p10 }
 0x19c   :  { %p2731_p13 = pnand %p2730_p12, %p2724_p9 }
 0x19e   :  { %2734 = shalt.err (!%p2731_p13)
}
 0x19f   :  { %267 = dma.hbm_to_vmem [thread:$0]  %s3606_s28, 16, %s265_s26, [#allocation33]  }
 0x1a0   :  { %2757 = dma.done.wait [#allocation3], 512  }
 0x1a1   :  { %2758 = vsyncadd [#allocation3], 4294966784 }
 0x1a2   :  { %2759 = dma.done.wait [#allocation6], 208  }
 0x1a3   :  { %2760 = vsyncadd [#allocation6], 4294967088 }
 0x1a4   :  { %2761 = dma.done.wait [#allocation9], 784  }
 0x1a5   :  { %2762 = vsyncadd [#allocation9], 4294966512 }
 0x1a6   :  { %2763 = dma.done.wait [#allocation12], 80  }
 0x1a7   :  { %2764 = vsyncadd [#allocation12], 4294967216 }
 0x1a8   :  { %2765 = dma.done.wait [#allocation15], 400  }
 0x1a9   :  { %2766 = vsyncadd [#allocation15], 4294966896 }
 0x1aa   :  { %2767 = dma.done.wait [#allocation18], 784  }
 0x1ab   :  { %2768 = vsyncadd [#allocation18], 4294966512 }
 0x1ac   :  { %2769 = dma.done.wait [#allocation21], 400  }
 0x1ad   :  { %2770 = vsyncadd [#allocation21], 4294966896 }
 0x1ae   :  { %2771 = dma.done.wait [#allocation24], 784  }
 0x1af   :  { %2772 = vsyncadd [#allocation24], 4294966512 }
 0x1b0   :  { %2773 = dma.done.wait [#allocation27], 400  }
 0x1b1   :  { %2774 = vsyncadd [#allocation27], 4294966896 }
 0x1b2   :  { %2775 = dma.done.wait [#allocation30], 784  }
 0x1b3   :  { %2776 = vsyncadd [#allocation30], 4294966512 }
 0x1b4   :  { %2777 = dma.done.wait [#allocation33], 144  }
 0x1b5   :  { %2778 = vsyncadd [#allocation33], 4294967152  ;;  %v339_v0 = vlaneseq  ;;  %v3203_v2 = vld [vmem:[#allocation2 + $0x10] sm:$0xff]  ;;  %v3205_v3 = vld [vmem:[#allocation2 + $0x18] sm:$0xff]  ;;  %vm427_vm2 = vcmask 1043456   ;;  %s2806_s30 = smov 16  }
 0x1b6   :  { %v3207_v4 = vld [vmem:[#allocation2] sm:$0xff]  ;;  %v372_v5 = vrot.slane %v3205_v3, 7  ;;  %v376_v6 = vrot.slane %v3205_v3, 1  ;;  %v2087_v7 = vpack.i.bf16 %v3205_v3, %v3203_v2  ;;  %v371_v8 = vrot.slane %v3203_v2, 7  ;;  %v3216_v9 = vld [vmem:[#allocation2 + $0x8] sm:$0xff]  ;;  %v2240_v53 = vld [vmem:[#allocation8 + $0x8] sm:$0xff]  }
 0x1b7   :  { %v3201_v1 = vshrl.u32 %v339_v0, 7  ;;  %v375_v10 = vrot.slane %v3203_v2, 1  ;;  %v660_v11 = vpack.c.bf16 %v3205_v3, %v3203_v2  ;;  %v345_v12 = vrot.slane %v3216_v9, 1  ;;  %v2237_v13 = vld [vmem:[#allocation5] sm:$0xff]   ;;  %v2238_v17 = vld [vmem:[#allocation5 + $0x8] ss:$0 sps:$4 sm:$0xff]  }
 0x1b8   :  { %2088 = vrot.lane.b32.xlu1 %v2087_v7, %s2795_s23  ;;  %v2077_v14 = vpack.i.bf16 %v3216_v9, %v3207_v4  ;;  %v344_v15 = vrot.slane %v3207_v4, 1  ;;  %1933 = vmatprep.subr.bf16.mxu0 %v2237_v13  ;;  %v429_v24 = vsel %vm427_vm2, %v2238_v17, 0  ;;  %v338_v27 = vrot.slane %v3216_v9, 7  ;;  %v2239_v52 = vld [vmem:[#allocation8] sm:$0xff]   ;;  %v2241_v54 = vld [vmem:[#allocation8 + $0x10] sm:$0xff]   ;;  %v2242_v55 = vld [vmem:[#allocation8 + $0x18] sm:$0xff]  }
 0x1b9   :  { %vm346_vm0 = vcmp.lt.s32.totalorder %v3201_v1, 7  ;;  %vm341_vm1 = vcmp.lt.s32.totalorder %v3201_v1, 1  ;;  %1934 = vmatpush3.bf16.msra.mxu0 %v2237_v13  ;;  %v337_v28 = vrot.slane %v3207_v4, 7  ;;  %vm365_vm3 = vcmask 64512   ;;  %1941 = vmatprep.subr.bf16.mxu1 %v2239_v52  ;;  %v1810_v56 = vld [vmem:[#allocation7] ss:$0 sm:$0xff] }
 0x1ba   :  { %v373_v16 = vsel %vm341_vm1, %v371_v8, %v372_v5  ;;  %v377_v18 = vsel %vm346_vm0, %v375_v10, %v376_v6  ;;  %v378_v19 = vsel %vm346_vm0, %v376_v6, %v375_v10  ;;  %v374_v20 = vsel %vm341_vm1, %v372_v5, %v371_v8  ;;  %2078 = vrot.lane.b32.xlu0 %v2077_v14, %s2795_s23  ;;  %v2243_v57 = vld [vmem:[#allocation8 + $0x20] sm:$0xff]   ;;  %v661_v6 = vld [vmem:[#allocation11] sm:$0xf]  ;;  %v2244_v7 = vld [vmem:[#allocation8 + $0x28] sm:$0xff]   ;;  %s2807_s18 = smov 32  }
 0x1bb   :  { %v2092_v21 = vpack.i.bf16 %v378_v19, %v377_v18  ;;  %v347_v22 = vsel %vm346_vm0, %v344_v15, %v345_v12  ;;  %v348_v23 = vsel %vm346_vm0, %v345_v12, %v344_v15  ;;  %2047 = vmatprep.subr.msk.bf16.mxu0 %vm427_vm2, %v2238_v17  ;;  %vm368_vm4 = vcmask 130048   ;;  %1942 = vmatpush3.bf16.msra.mxu1 %v2239_v52 }
 0x1bc   :  { %v2082_v25 = vpack.i.bf16 %v348_v23, %v347_v22  ;;  %v342_v37 = vsel %vm341_vm1, %v337_v28, %v338_v27  ;;  %v343_v38 = vsel %vm341_vm1, %v338_v27, %v337_v28  ;;  %vm420_vm5 = vcmask 195584   ;;  %1943 = vmatprep.subr.bf16.mxu1 %v2240_v53 }
 0x1bd   :  { %2093 = vrot.lane.b32.xlu1 %v2092_v21, %s2806_s30  ;;  %1936 = vmatpush3.bf16.msra.mxu0 %v429_v24  ;;  %v676_v12 = vsel %vm427_vm2, %v661_v6, 0  ;;  %v659_v17 = vpack.c.bf16 %v3216_v9, %v3207_v4  ;;  %vm508_vm6 = vcmask 261120   ;;  %vm511_vm7 = vcmask 523264  }
 0x1be   :  { %2083 = vrot.lane.b32.xlu0 %v2082_v25, %s2806_s30  ;;  %2048 = vmatprep.subr.msk.bf16.mxu0 %vm427_vm2, %v661_v6  ;;  %vm599_vm8 = vcmask 785408   ;;  %vm738_vm9 = vcmp.lt.s32.totalorder %v3201_v1, 6  ;;  %vm733_vm10 = vcmp.lt.s32.totalorder %v3201_v1, 2  ;;  %vm822_vm11 = vcmask 392192  }
 0x1bf   :  { %1944 = vmatpush3.bf16.msra.mxu1 %v2240_v53 }
 0x1c0   :  { %1945 = vmatprep.subr.bf16.mxu1 %v2241_v54 }
 0x1c3   :  { %1946 = vmatpush3.bf16.msra.mxu1 %v2241_v54 }
 0x1c4   :  { %1947 = vmatprep.subr.bf16.mxu1 %v2242_v55 }
 0x1c7   :  { %1948 = vmatpush3.bf16.msra.mxu1 %v2242_v55 }
 0x1c8   :  { %1949 = vmatprep.subr.bf16.mxu1 %v2243_v57 }
 0x1cb   :  { %1950 = vmatpush3.bf16.msra.mxu1 %v2243_v57  ;;  %v1824_v57 = vld [vmem:[#allocation13] ss:$0 sm:$0xff] }
 0x1cc   :  { %1951 = vmatprep.subr.bf16.mxu1 %v2244_v7 }
 0x1cf   :  { %1952 = vmatpush3.bf16.msra.mxu1 %v2244_v7  ;;  %v2246_v7 = vld [vmem:[#allocation14 + $0x8] sm:$0xff]  }
 0x22a   :  { %v2089_v26 = vpop.permute.xlu1 %2088 }
 0x22b   :  { %v2091_v29 = vunpack.i.h.bf16 %v2089_v26  ;;  %v2090_v30 = vunpack.i.l.bf16 %v2089_v26 }
 0x22c   :  { %v2079_v31 = vpop.permute.xlu0 %2078 }
 0x22d   :  { %v2081_v32 = vunpack.i.h.bf16 %v2079_v31  ;;  %v2080_v33 = vunpack.i.l.bf16 %v2079_v31  ;;  %v395_v39 = vsel %vm365_vm3, %v374_v20, %v2090_v30  ;;  %v396_v40 = vsel %vm365_vm3, %v373_v16, %v2091_v29 }
 0x22f   :  { %v2094_v34 = vpop.permute.xlu1 %2093  ;;  %v366_v47 = vsel %vm365_vm3, %v343_v38, %v2080_v33  ;;  %v367_v48 = vsel %vm365_vm3, %v342_v37, %v2081_v32 }
 0x230   :  { %v2096_v35 = vunpack.i.h.bf16 %v2094_v34  ;;  %v2095_v36 = vunpack.i.l.bf16 %v2094_v34  ;;  %v2084_v41 = vpop.permute.xlu0 %2083 }
 0x231   :  { %v2086_v44 = vunpack.i.h.bf16 %v2084_v41  ;;  %v2085_v45 = vunpack.i.l.bf16 %v2084_v41 }
 0x232   :  { %v397_v42 = vsel %vm368_vm4, %v395_v39, %v2095_v36  ;;  %v398_v43 = vsel %vm368_vm4, %v396_v40, %v2096_v35 }
 0x233   :  { %v400_v46 = vpack.c.bf16 %v398_v43, %v397_v42  ;;  %v369_v49 = vsel %vm368_vm4, %v366_v47, %v2085_v45  ;;  %v370_v50 = vsel %vm368_vm4, %v367_v48, %v2086_v44 }
 0x234   :  { %v399_v51 = vpack.c.bf16 %v370_v50, %v369_v49 }
 0x236   :  { %1937 = vmatprep.mubr.msk.bf16.mxu0 %vm420_vm5, %v399_v51 }
 0x237   :  { %1938 = vmatmul.mubr.msk.bf16.vlgmr.msra.gmra.mrb[0].mxu0 %vm420_vm5, %v400_v46 }
 0x238   :  { %1958 = vmatpush3.bf16.msra.mxu0 %v676_v12  ;;  %1959 = vmatprep.mubr.msk.bf16.mxu0 %vm365_vm3, %v659_v17 }
 0x23f   :  { %1960 = vmatmul.mubr.msk.bf16.vlgmr.msra.gmra.mrb[4].mxu0 %vm365_vm3, %v660_v11 }
 0x30a   :  { %v1939_v58 = vpop.f32.mrb[0].mxu0 }
 0x30b   :  { %v474_v59 = vadd.f32 %v1939_v58, %v1810_v56  ;;  %v465_v60 = vpop.f32.mrb[1].mxu0  ;;  %v1815_v58 = vld [vmem:[#allocation10] ss:$0 sm:$0xff] }
 0x30c   :  { %v466_v61 = vadd.f32 %v1810_v56, %v465_v60  ;;  %v1940_v62 = vpop.f32.mrb[2].mxu0 }
 0x30d   :  { %v482_v63 = vmax.f32 %v474_v59, 0.0  ;;  %v477_v0 = vadd.f32 %v1940_v62, %v1810_v56  ;;  %v468_v5 = vpop.f32.mrb[3].mxu0  ;;  %v2245_v59 = vld [vmem:[#allocation14] sm:$0xff]  }
 0x30e   :  { %v480_v8 = vmax.f32 %v466_v61, 0.0  ;;  %v469_v10 = vadd.f32 %v1810_v56, %v468_v5  ;;  %1963 = vmatprep.subr.bf16.mxu0 %v2245_v59 }
 0x30f   :  { %v483_v13 = vmax.f32 %v477_v0, 0.0  ;;  %v514_v14 = vrot.slane %v482_v63, 7  ;;  %v518_v15 = vrot.slane %v482_v63, 1  ;;  %1964 = vmatpush3.bf16.msra.mxu0 %v2245_v59 }
 0x310   :  { %v481_v16 = vmax.f32 %v469_v10, 0.0  ;;  %v484_v18 = vrot.slane %v480_v8, 7  ;;  %v488_v22 = vrot.slane %v480_v8, 1  ;;  %1965 = vmatprep.subr.bf16.mxu0 %v2246_v7 }
 0x311   :  { %v515_v19 = vrot.slane %v483_v13, 7  ;;  %v519_v20 = vrot.slane %v483_v13, 1  ;;  %v2102_v21 = vpack.i.bf16 %v483_v13, %v482_v63 }
 0x312   :  { %v485_v23 = vrot.slane %v481_v16, 7  ;;  %v489_v24 = vrot.slane %v481_v16, 1  ;;  %v2097_v25 = vpack.i.bf16 %v481_v16, %v480_v8  ;;  %v1961_v53 = vpop.f32.mrb[4].mxu0 }
 0x313   :  { %v520_v26 = vsel %vm346_vm0, %v518_v15, %v519_v20  ;;  %v521_v27 = vsel %vm346_vm0, %v519_v20, %v518_v15  ;;  %v516_v28 = vsel %vm341_vm1, %v514_v14, %v515_v19  ;;  %v517_v4 = vsel %vm341_vm1, %v515_v19, %v514_v14  ;;  %v712_v54 = vpop.f32.mrb[5].mxu0  ;;  %1966 = vmatpush3.bf16.msra.mxu0 %v2246_v7  ;;  %v2252_v7 = vld [vmem:[#allocation17 + $0x20] sm:$0xff]  }
 0x314   :  { %2098 = vrot.lane.b32.xlu0 %v2097_v25, %s2807_s18  ;;  %v490_v9 = vsel %vm346_vm0, %v488_v22, %v489_v24  ;;  %v491_v29 = vsel %vm346_vm0, %v489_v24, %v488_v22  ;;  %v2112_v30 = vpack.i.bf16 %v521_v27, %v520_v26  ;;  %v486_v31 = vsel %vm341_vm1, %v484_v18, %v485_v23  ;;  %v1962_v55 = vpop.f32.mrb[6].mxu0 }
 0x315   :  { %v2107_v32 = vpack.i.bf16 %v491_v29, %v490_v9  ;;  %v487_v33 = vsel %vm341_vm1, %v485_v23, %v484_v18  ;;  %v715_v56 = vpop.f32.mrb[7].mxu0  ;;  %v721_v61 = vadd.f32 %v1961_v53, %v1824_v57  ;;  %v713_v0 = vadd.f32 %v1824_v57, %v712_v54 }
 0x316   :  { %v724_v16 = vadd.f32 %v1962_v55, %v1824_v57  ;;  %v716_v19 = vadd.f32 %v1824_v57, %v715_v56 }
 0x317   :  { %2108 = vrot.lane.b32.xlu1 %v2107_v32, %s2782_s22 }
 0x318   :  { %2103 = vrot.lane.b32.xlu0 %v2102_v21, %s2807_s18  ;;  %v2247_v21 = vld [vmem:[#allocation14 + $0x10] sm:$0xff]  }
 0x319   :  { %1967 = vmatprep.subr.bf16.mxu0 %v2247_v21 }
 0x31a   :  { %1968 = vmatpush3.bf16.msra.mxu0 %v2247_v21  ;;  %v2253_v21 = vld [vmem:[#allocation17 + $0x28] sm:$0xff]  }
 0x31b   :  { %2113 = vrot.lane.b32.xlu1 %v2112_v30, %s2782_s22 }
 0x386   :  { %v2099_v2 = vpop.permute.xlu0 %2098 }
 0x387   :  { %v2101_v3 = vunpack.i.h.bf16 %v2099_v2  ;;  %v2100_v11 = vunpack.i.l.bf16 %v2099_v2 }
 0x389   :  { %v2109_v34 = vpop.permute.xlu1 %2108  ;;  %v509_v40 = vsel %vm508_vm6, %v487_v33, %v2100_v11  ;;  %v510_v41 = vsel %vm508_vm6, %v486_v31, %v2101_v3 }
 0x38a   :  { %v2111_v35 = vunpack.i.h.bf16 %v2109_v34  ;;  %v2110_v36 = vunpack.i.l.bf16 %v2109_v34  ;;  %v2104_v37 = vpop.permute.xlu0 %2103 }
 0x38b   :  { %v2106_v38 = vunpack.i.h.bf16 %v2104_v37  ;;  %v2105_v39 = vunpack.i.l.bf16 %v2104_v37 }
 0x38c   :  { %v512_v42 = vsel %vm511_vm7, %v509_v40, %v2110_v36  ;;  %v513_v43 = vsel %vm511_vm7, %v510_v41, %v2111_v35 }
 0x38d   :  { %v2114_v44 = vpop.permute.xlu1 %2113  ;;  %v542_v45 = vpack.c.bf16 %v513_v43, %v512_v42  ;;  %v539_v48 = vsel %vm508_vm6, %v516_v28, %v2106_v38  ;;  %v538_v49 = vsel %vm508_vm6, %v517_v4, %v2105_v39 }
 0x38e   :  { %v2116_v46 = vunpack.i.h.bf16 %v2114_v44  ;;  %v2115_v47 = vunpack.i.l.bf16 %v2114_v44 }
 0x38f   :  { %1953 = vmatprep.mubr.msk.bf16.mxu1 %vm599_vm8, %v542_v45 }
 0x390   :  { %v541_v50 = vsel %vm511_vm7, %v539_v48, %v2116_v46  ;;  %v540_v51 = vsel %vm511_vm7, %v538_v49, %v2115_v47 }
 0x391   :  { %v543_v52 = vpack.c.bf16 %v541_v50, %v540_v51 }
 0x393   :  { %1954 = vmatmul.mubr.msk.bf16.vlgmr.msra.gmra.mrb[0].mxu1 %vm599_vm8, %v543_v52 }
 0x466   :  { %v1955_v60 = vpop.f32.mrb[0].mxu1 }
 0x467   :  { %v649_v62 = vadd.f32 %v1955_v60, %v1815_v58  ;;  %v640_v63 = vpop.f32.mrb[1].mxu1 }
 0x468   :  { %v641_v5 = vadd.f32 %v1815_v58, %v640_v63  ;;  %v1956_v6 = vpop.f32.mrb[2].mxu1  ;;  %v2250_v63 = vld [vmem:[#allocation17 + $0x10] sm:$0xff]  }
 0x469   :  { %v657_v8 = vmax.f32 %v649_v62, 0.0  ;;  %v652_v10 = vadd.f32 %v1956_v6, %v1815_v58  ;;  %v643_v12 = vpop.f32.mrb[3].mxu1  ;;  %v2249_v62 = vld [vmem:[#allocation17 + $0x8] sm:$0xff]  }
 0x46a   :  { %v655_v13 = vmax.f32 %v641_v5, 0.0  ;;  %v644_v14 = vadd.f32 %v1815_v58, %v643_v12  ;;  %v1827_v5 = vld [vmem:[#allocation16] ss:$0 sm:$0xff] }
 0x46b   :  { %v3296_v15 = vadd.f32 %v721_v61, %v657_v8  ;;  %v658_v17 = vmax.f32 %v652_v10, 0.0  ;;  %v2248_v61 = vld [vmem:[#allocation17] sm:$0xff]  }
 0x46c   :  { %v3298_v18 = vadd.f32 %v713_v0, %v655_v13  ;;  %v656_v20 = vmax.f32 %v644_v14, 0.0  ;;  %1973 = vmatprep.subr.bf16.mxu1 %v2248_v61  ;;  %v2251_v0 = vld [vmem:[#allocation17 + $0x18] sm:$0xff]  }
 0x46d   :  { %v3300_v22 = vadd.f32 %v724_v16, %v658_v17  ;;  %v765_v9 = vrot.slane %v3296_v15, 2  ;;  %v761_v47 = vrot.slane %v3296_v15, 6  ;;  %1974 = vmatpush3.bf16.msra.mxu1 %v2248_v61 }
 0x46e   :  { %v3302_v23 = vadd.f32 %v716_v19, %v656_v20  ;;  %v736_v25 = vrot.slane %v3298_v18, 2  ;;  %v731_v35 = vrot.slane %v3298_v18, 6  ;;  %1975 = vmatprep.subr.bf16.mxu1 %v2249_v62 }
 0x46f   :  { %v766_v27 = vrot.slane %v3300_v22, 2  ;;  %v2122_v30 = vpack.i.bf16 %v3300_v22, %v3296_v15  ;;  %v762_v36 = vrot.slane %v3300_v22, 6 }
 0x470   :  { %v2117_v24 = vpack.i.bf16 %v3302_v23, %v3298_v18  ;;  %v737_v26 = vrot.slane %v3302_v23, 2  ;;  %v732_v2 = vrot.slane %v3302_v23, 6 }
 0x471   :  { %v767_v31 = vsel %vm738_vm9, %v765_v9, %v766_v27  ;;  %v768_v32 = vsel %vm738_vm9, %v766_v27, %v765_v9  ;;  %v763_v52 = vsel %vm733_vm10, %v761_v47, %v762_v36  ;;  %v764_v53 = vsel %vm733_vm10, %v762_v36, %v761_v47  ;;  %1976 = vmatpush3.bf16.msra.mxu1 %v2249_v62 }
 0x472   :  { %2118 = vrot.lane.b32.xlu0 %v2117_v24, %s2806_s30  ;;  %v739_v28 = vsel %vm738_vm9, %v736_v25, %v737_v26  ;;  %v740_v4 = vsel %vm738_vm9, %v737_v26, %v736_v25  ;;  %v2132_v33 = vpack.i.bf16 %v768_v32, %v767_v31  ;;  %v734_v38 = vsel %vm733_vm10, %v731_v35, %v732_v2 }
 0x473   :  { %v2127_v29 = vpack.i.bf16 %v740_v4, %v739_v28  ;;  %v735_v39 = vsel %vm733_vm10, %v732_v2, %v731_v35  ;;  %1977 = vmatprep.subr.bf16.mxu1 %v2250_v63 }
 0x475   :  { %2128 = vrot.lane.b32.xlu1 %v2127_v29, %s2807_s18  ;;  %1978 = vmatpush3.bf16.msra.mxu1 %v2250_v63  ;;  %v1833_v63 = vld [vmem:[#allocation19] ss:$0 sm:$0xff] }
 0x476   :  { %2123 = vrot.lane.b32.xlu0 %v2122_v30, %s2806_s30  ;;  %1979 = vmatprep.subr.bf16.mxu1 %v2251_v0 }
 0x479   :  { %2133 = vrot.lane.b32.xlu1 %v2132_v33, %s2807_s18  ;;  %1980 = vmatpush3.bf16.msra.mxu1 %v2251_v0  ;;  %v2254_v0 = vld [vmem:[#allocation20] sm:$0xff]  }
 0x47a   :  { %1981 = vmatprep.subr.bf16.mxu1 %v2252_v7  ;;  %1989 = vmatprep.subr.bf16.mxu0 %v2254_v0 }
 0x47d   :  { %1982 = vmatpush3.bf16.msra.mxu1 %v2252_v7 }
 0x47e   :  { %1983 = vmatprep.subr.bf16.mxu1 %v2253_v21 }
 0x481   :  { %1984 = vmatpush3.bf16.msra.mxu1 %v2253_v21 }
 0x4e4   :  { %v2119_v3 = vpop.permute.xlu0 %2118 }
 0x4e5   :  { %v2121_v11 = vunpack.i.h.bf16 %v2119_v3  ;;  %v2120_v34 = vunpack.i.l.bf16 %v2119_v3 }
 0x4e7   :  { %v2129_v37 = vpop.permute.xlu1 %2128  ;;  %v757_v43 = vsel %vm368_vm4, %v735_v39, %v2120_v34  ;;  %v758_v44 = vsel %vm368_vm4, %v734_v38, %v2121_v11 }
 0x4e8   :  { %v2131_v40 = vunpack.i.h.bf16 %v2129_v37  ;;  %v2130_v41 = vunpack.i.l.bf16 %v2129_v37  ;;  %v2124_v42 = vpop.permute.xlu0 %2123 }
 0x4e9   :  { %v2126_v45 = vunpack.i.h.bf16 %v2124_v42  ;;  %v2125_v46 = vunpack.i.l.bf16 %v2124_v42 }
 0x4ea   :  { %v759_v48 = vsel %vm508_vm6, %v757_v43, %v2130_v41  ;;  %v760_v49 = vsel %vm508_vm6, %v758_v44, %v2131_v40 }
 0x4eb   :  { %v789_v50 = vpack.c.bf16 %v760_v49, %v759_v48  ;;  %v2134_v51 = vpop.permute.xlu1 %2133  ;;  %v786_v56 = vsel %vm368_vm4, %v763_v52, %v2126_v45  ;;  %v785_v57 = vsel %vm368_vm4, %v764_v53, %v2125_v46 }
 0x4ec   :  { %v2136_v54 = vunpack.i.h.bf16 %v2134_v51  ;;  %v2135_v55 = vunpack.i.l.bf16 %v2134_v51 }
 0x4ed   :  { %1969 = vmatprep.mubr.msk.bf16.mxu0 %vm822_vm11, %v789_v50 }
 0x4ee   :  { %v788_v58 = vsel %vm508_vm6, %v786_v56, %v2136_v54  ;;  %v787_v59 = vsel %vm508_vm6, %v785_v57, %v2135_v55 }
 0x4ef   :  { %v790_v60 = vpack.c.bf16 %v788_v58, %v787_v59 }
 0x4f1   :  { %1970 = vmatmul.mubr.msk.bf16.vlgmr.msra.gmra.mrb[8].mxu0 %vm822_vm11, %v790_v60 }
 0x4f2   :  { %1990 = vmatpush3.bf16.msra.mxu0 %v2254_v0  ;;  %v2259_v0 = vld [vmem:[#allocation23 + $0x10] sm:$0xff]  }
 0x5c4   :  { %v1971_v6 = vpop.f32.mrb[8].mxu0 }
 0x5c5   :  { %v872_v8 = vadd.f32 %v1971_v6, %v1827_v5  ;;  %v863_v10 = vpop.f32.mrb[9].mxu0 }
 0x5c6   :  { %v864_v12 = vadd.f32 %v1827_v5, %v863_v10  ;;  %v1972_v13 = vpop.f32.mrb[10].mxu0 }
 0x5c7   :  { %v880_v14 = vmax.f32 %v872_v8, 0.0  ;;  %v875_v16 = vadd.f32 %v1972_v13, %v1827_v5  ;;  %v866_v17 = vpop.f32.mrb[11].mxu0 }
 0x5c8   :  { %v878_v19 = vmax.f32 %v864_v12, 0.0  ;;  %v867_v20 = vadd.f32 %v1827_v5, %v866_v17  ;;  %v2255_v12 = vld [vmem:[#allocation20 + $0x8] sm:$0xff]  }
 0x5c9   :  { %v881_v24 = vmax.f32 %v875_v16, 0.0  ;;  %v910_v25 = vrot.slane %v880_v14, 6  ;;  %v914_v26 = vrot.slane %v880_v14, 2  ;;  %1991 = vmatprep.subr.bf16.mxu0 %v2255_v12 }
 0x5ca   :  { %v879_v27 = vmax.f32 %v867_v20, 0.0  ;;  %v882_v28 = vrot.slane %v878_v19, 6  ;;  %v886_v30 = vrot.slane %v878_v19, 2  ;;  %1992 = vmatpush3.bf16.msra.mxu0 %v2255_v12 }
 0x5cb   :  { %v911_v4 = vrot.slane %v881_v24, 6  ;;  %v915_v9 = vrot.slane %v881_v24, 2  ;;  %v2142_v29 = vpack.i.bf16 %v881_v24, %v880_v14 }
 0x5cc   :  { %v883_v31 = vrot.slane %v879_v27, 6  ;;  %v887_v32 = vrot.slane %v879_v27, 2  ;;  %v2137_v33 = vpack.i.bf16 %v879_v27, %v878_v19 }
 0x5cd   :  { %v916_v2 = vsel %vm738_vm9, %v914_v26, %v915_v9  ;;  %v917_v3 = vsel %vm738_vm9, %v915_v9, %v914_v26  ;;  %v912_v11 = vsel %vm733_vm10, %v910_v25, %v911_v4  ;;  %v913_v34 = vsel %vm733_vm10, %v911_v4, %v910_v25  ;;  %v2256_v25 = vld [vmem:[#allocation20 + $0x10] sm:$0xff]  }
 0x5ce   :  { %2138 = vrot.lane.b32.xlu0 %v2137_v33, %s2807_s18  ;;  %v888_v35 = vsel %vm738_vm9, %v886_v30, %v887_v32  ;;  %v889_v36 = vsel %vm738_vm9, %v887_v32, %v886_v30  ;;  %v2152_v37 = vpack.i.bf16 %v917_v3, %v916_v2  ;;  %v884_v38 = vsel %vm733_vm10, %v882_v28, %v883_v31 }
 0x5cf   :  { %v2147_v39 = vpack.i.bf16 %v889_v36, %v888_v35  ;;  %v885_v40 = vsel %vm733_vm10, %v883_v31, %v882_v28  ;;  %1993 = vmatprep.subr.bf16.mxu0 %v2256_v25 }
 0x5d0   :  { %1994 = vmatpush3.bf16.msra.mxu0 %v2256_v25  ;;  %v2262_v25 = vld [vmem:[#allocation23 + $0x28] sm:$0xff]  }
 0x5d1   :  { %2148 = vrot.lane.b32.xlu1 %v2147_v39, %s2782_s22 }
 0x5d2   :  { %2143 = vrot.lane.b32.xlu0 %v2142_v29, %s2807_s18 }
 0x5d5   :  { %2153 = vrot.lane.b32.xlu1 %v2152_v37, %s2782_s22 }
 0x640   :  { %v2139_v41 = vpop.permute.xlu0 %2138 }
 0x641   :  { %v2141_v42 = vunpack.i.h.bf16 %v2139_v41  ;;  %v2140_v43 = vunpack.i.l.bf16 %v2139_v41 }
 0x643   :  { %v2149_v44 = vpop.permute.xlu1 %2148  ;;  %v906_v48 = vsel %vm508_vm6, %v885_v40, %v2140_v43  ;;  %v907_v49 = vsel %vm508_vm6, %v884_v38, %v2141_v42 }
 0x644   :  { %v2151_v45 = vunpack.i.h.bf16 %v2149_v44  ;;  %v2150_v46 = vunpack.i.l.bf16 %v2149_v44  ;;  %v2144_v47 = vpop.permute.xlu0 %2143 }
 0x645   :  { %v2146_v50 = vunpack.i.h.bf16 %v2144_v47  ;;  %v2145_v51 = vunpack.i.l.bf16 %v2144_v47 }
 0x646   :  { %v908_v52 = vsel %vm511_vm7, %v906_v48, %v2150_v46  ;;  %v909_v53 = vsel %vm511_vm7, %v907_v49, %v2151_v45 }
 0x647   :  { %v938_v54 = vpack.c.bf16 %v909_v53, %v908_v52  ;;  %v2154_v55 = vpop.permute.xlu1 %2153  ;;  %v935_v58 = vsel %vm508_vm6, %v912_v11, %v2146_v50  ;;  %v934_v59 = vsel %vm508_vm6, %v913_v34, %v2145_v51 }
 0x648   :  { %v2156_v56 = vunpack.i.h.bf16 %v2154_v55  ;;  %v2155_v57 = vunpack.i.l.bf16 %v2154_v55 }
 0x649   :  { %1985 = vmatprep.mubr.msk.bf16.mxu1 %vm599_vm8, %v938_v54 }
 0x64a   :  { %v937_v60 = vsel %vm511_vm7, %v935_v58, %v2156_v56  ;;  %v936_v61 = vsel %vm511_vm7, %v934_v59, %v2155_v57 }
 0x64b   :  { %v939_v62 = vpack.c.bf16 %v937_v60, %v936_v61 }
 0x64d   :  { %1986 = vmatmul.mubr.msk.bf16.vlgmr.msra.gmra.mrb[4].mxu1 %vm599_vm8, %v939_v62  ;;  %v2257_v62 = vld [vmem:[#allocation23] sm:$0xff]  }
 0x64e   :  { %1999 = vmatprep.subr.bf16.mxu0 %v2257_v62 }
 0x720   :  { %v1987_v5 = vpop.f32.mrb[4].mxu1 }
 0x721   :  { %v1044_v6 = vadd.f32 %v1987_v5, %v1833_v63  ;;  %v1035_v7 = vpop.f32.mrb[5].mxu1  ;;  %v2260_v5 = vld [vmem:[#allocation23 + $0x18] sm:$0xff]  }
 0x722   :  { %v1036_v8 = vadd.f32 %v1833_v63, %v1035_v7  ;;  %v1988_v10 = vpop.f32.mrb[6].mxu1 }
 0x723   :  { %v1047_v13 = vadd.f32 %v1988_v10, %v1833_v63  ;;  %v1038_v14 = vpop.f32.mrb[7].mxu1  ;;  %v1052_v16 = vmax.f32 %v1044_v6, 0.0  ;;  %v1842_v6 = vld [vmem:[#allocation22] ss:$0 sm:$0xff] }
 0x724   :  { %v1050_v17 = vmax.f32 %v1036_v8, 0.0  ;;  %v1039_v19 = vadd.f32 %v1833_v63, %v1038_v14  ;;  %v2258_v63 = vld [vmem:[#allocation23 + $0x8] sm:$0xff]   ;;  %v2261_v8 = vld [vmem:[#allocation23 + $0x20] sm:$0xff]  }
 0x725   :  { %v1053_v20 = vmax.f32 %v1047_v13, 0.0  ;;  %v3385_v27 = vadd.f32 %v1052_v16, %v3296_v15 }
 0x726   :  { %v3379_v21 = vadd.f32 %v1050_v17, %v3298_v18  ;;  %v1051_v24 = vmax.f32 %v1039_v19, 0.0 }
 0x727   :  { %v3382_v26 = vadd.f32 %v1053_v20, %v3300_v22  ;;  %v1086_v48 = vrot.slane %v3385_v27, 7 }
 0x728   :  { %v3388_v28 = vadd.f32 %v1051_v24, %v3302_v23  ;;  %v1062_v9 = vrot.slane %v3379_v21, 1  ;;  %v1090_v23 = vrot.slane %v3385_v27, 1  ;;  %v1058_v36 = vrot.slane %v3379_v21, 7 }
 0x729   :  { %v1091_v29 = vrot.slane %v3382_v26, 1  ;;  %v2162_v31 = vpack.i.bf16 %v3382_v26, %v3385_v27  ;;  %v1087_v37 = vrot.slane %v3382_v26, 7 }
 0x72a   :  { %v2157_v4 = vpack.i.bf16 %v3388_v28, %v3379_v21  ;;  %v1063_v18 = vrot.slane %v3388_v28, 1  ;;  %v1059_v3 = vrot.slane %v3388_v28, 7 }
 0x72b   :  { %v1092_v32 = vsel %vm346_vm0, %v1090_v23, %v1091_v29  ;;  %v1093_v33 = vsel %vm346_vm0, %v1091_v29, %v1090_v23  ;;  %v1088_v53 = vsel %vm341_vm1, %v1086_v48, %v1087_v37  ;;  %v1089_v54 = vsel %vm341_vm1, %v1087_v37, %v1086_v48 }
 0x72c   :  { %2158 = vrot.lane.b32.xlu0 %v2157_v4, %s2806_s30  ;;  %v1064_v15 = vsel %vm346_vm0, %v1062_v9, %v1063_v18  ;;  %v1065_v22 = vsel %vm346_vm0, %v1063_v18, %v1062_v9  ;;  %v2172_v2 = vpack.i.bf16 %v1093_v33, %v1092_v32  ;;  %v1060_v39 = vsel %vm341_vm1, %v1058_v36, %v1059_v3 }
 0x72d   :  { %v2167_v30 = vpack.i.bf16 %v1065_v22, %v1064_v15  ;;  %v1061_v40 = vsel %vm341_vm1, %v1059_v3, %v1058_v36 }
 0x72f   :  { %2168 = vrot.lane.b32.xlu1 %v2167_v30, %s2807_s18 }
 0x730   :  { %2163 = vrot.lane.b32.xlu0 %v2162_v31, %s2806_s30 }
 0x733   :  { %2173 = vrot.lane.b32.xlu1 %v2172_v2, %s2807_s18 }
 0x79e   :  { %v2159_v11 = vpop.permute.xlu0 %2158 }
 0x79f   :  { %v2161_v34 = vunpack.i.h.bf16 %v2159_v11  ;;  %v2160_v35 = vunpack.i.l.bf16 %v2159_v11 }
 0x7a1   :  { %v2169_v38 = vpop.permute.xlu1 %2168  ;;  %v1082_v44 = vsel %vm368_vm4, %v1061_v40, %v2160_v35  ;;  %v1083_v45 = vsel %vm368_vm4, %v1060_v39, %v2161_v34 }
 0x7a2   :  { %v2171_v41 = vunpack.i.h.bf16 %v2169_v38  ;;  %v2170_v42 = vunpack.i.l.bf16 %v2169_v38  ;;  %v2164_v43 = vpop.permute.xlu0 %2163 }
 0x7a3   :  { %v2166_v46 = vunpack.i.h.bf16 %v2164_v43  ;;  %v2165_v47 = vunpack.i.l.bf16 %v2164_v43 }
 0x7a4   :  { %v1084_v49 = vsel %vm508_vm6, %v1082_v44, %v2170_v42  ;;  %v1085_v50 = vsel %vm508_vm6, %v1083_v45, %v2171_v41 }
 0x7a5   :  { %v1114_v51 = vpack.c.bf16 %v1085_v50, %v1084_v49  ;;  %v2174_v52 = vpop.permute.xlu1 %2173  ;;  %v1111_v57 = vsel %vm368_vm4, %v1088_v53, %v2166_v46  ;;  %v1110_v58 = vsel %vm368_vm4, %v1089_v54, %v2165_v47 }
 0x7a6   :  { %v2176_v55 = vunpack.i.h.bf16 %v2174_v52  ;;  %v2175_v56 = vunpack.i.l.bf16 %v2174_v52 }
 0x7a7   :  { %1995 = vmatprep.mubr.msk.bf16.mxu0 %vm822_vm11, %v1114_v51 }
 0x7a8   :  { %v1113_v59 = vsel %vm508_vm6, %v1111_v57, %v2176_v55  ;;  %v1112_v60 = vsel %vm508_vm6, %v1110_v58, %v2175_v56 }
 0x7a9   :  { %v1115_v61 = vpack.c.bf16 %v1113_v59, %v1112_v60 }
 0x7ab   :  { %1996 = vmatmul.mubr.msk.bf16.vlgmr.msra.gmra.mrb[12].mxu0 %vm822_vm11, %v1115_v61 }
 0x7ac   :  { %2000 = vmatpush3.bf16.msra.mxu0 %v2257_v62 }
 0x7ad   :  { %2001 = vmatprep.subr.bf16.mxu0 %v2258_v63 }
 0x7b0   :  { %2002 = vmatpush3.bf16.msra.mxu0 %v2258_v63 }
 0x7b1   :  { %2003 = vmatprep.subr.bf16.mxu0 %v2259_v0 }
 0x7b4   :  { %2004 = vmatpush3.bf16.msra.mxu0 %v2259_v0  ;;  %v2263_v0 = vld [vmem:[#allocation32] sm:$0xff]  }
 0x7b5   :  { %2005 = vmatprep.subr.bf16.mxu0 %v2260_v5 }
 0x7b8   :  { %2006 = vmatpush3.bf16.msra.mxu0 %v2260_v5  ;;  %v1848_v5 = vld [vmem:[#allocation25] ss:$0 sm:$0xff] }
 0x7b9   :  { %2007 = vmatprep.subr.bf16.mxu0 %v2261_v8 }
 0x7bc   :  { %2008 = vmatpush3.bf16.msra.mxu0 %v2261_v8 }
 0x7bd   :  { %2009 = vmatprep.subr.bf16.mxu0 %v2262_v25 }
 0x7c0   :  { %2010 = vmatpush3.bf16.msra.mxu0 %v2262_v25 }
 0x7c1   :  { %2041 = vmatprep.subr.bf16.mxu0 %v2263_v0 }
 0x87e   :  { %v1997_v7 = vpop.f32.mrb[12].mxu0 }
 0x87f   :  { %v1196_v10 = vadd.f32 %v1997_v7, %v1842_v6  ;;  %v1187_v12 = vpop.f32.mrb[13].mxu0 }
 0x880   :  { %v1188_v13 = vadd.f32 %v1842_v6, %v1187_v12  ;;  %v1998_v14 = vpop.f32.mrb[14].mxu0 }
 0x881   :  { %v1204_v16 = vmax.f32 %v1196_v10, 0.0  ;;  %v1199_v17 = vadd.f32 %v1998_v14, %v1842_v6  ;;  %v1190_v19 = vpop.f32.mrb[15].mxu0  ;;  %v2265_v14 = vld [vmem:[#allocation26 + $0x8] sm:$0xff]  }
 0x882   :  { %v1202_v20 = vmax.f32 %v1188_v13, 0.0  ;;  %v1191_v24 = vadd.f32 %v1842_v6, %v1190_v19  ;;  %v2264_v6 = vld [vmem:[#allocation26] sm:$0xff]  }
 0x883   :  { %v1205_v4 = vmax.f32 %v1199_v17, 0.0  ;;  %v1234_v9 = vrot.slane %v1204_v16, 7  ;;  %v1238_v18 = vrot.slane %v1204_v16, 1  ;;  %2015 = vmatprep.subr.bf16.mxu1 %v2264_v6 }
 0x884   :  { %v1203_v29 = vmax.f32 %v1191_v24, 0.0  ;;  %v1206_v15 = vrot.slane %v1202_v20, 7  ;;  %v1210_v31 = vrot.slane %v1202_v20, 1  ;;  %2016 = vmatpush3.bf16.msra.mxu1 %v2264_v6 }
 0x885   :  { %v1235_v22 = vrot.slane %v1205_v4, 7  ;;  %v1239_v23 = vrot.slane %v1205_v4, 1  ;;  %v2182_v30 = vpack.i.bf16 %v1205_v4, %v1204_v16  ;;  %2017 = vmatprep.subr.bf16.mxu1 %v2265_v14 }
 0x886   :  { %v1207_v32 = vrot.slane %v1203_v29, 7  ;;  %v1211_v33 = vrot.slane %v1203_v29, 1  ;;  %v2177_v2 = vpack.i.bf16 %v1203_v29, %v1202_v20  ;;  %v2266_v29 = vld [vmem:[#allocation26 + $0x10] sm:$0xff]  }
 0x887   :  { %v1240_v3 = vsel %vm346_vm0, %v1238_v18, %v1239_v23  ;;  %v1241_v11 = vsel %vm346_vm0, %v1239_v23, %v1238_v18  ;;  %v1236_v34 = vsel %vm341_vm1, %v1234_v9, %v1235_v22  ;;  %v1237_v35 = vsel %vm341_vm1, %v1235_v22, %v1234_v9 }
 0x888   :  { %2178 = vrot.lane.b32.xlu0 %v2177_v2, %s2807_s18  ;;  %v1212_v36 = vsel %vm346_vm0, %v1210_v31, %v1211_v33  ;;  %v1213_v37 = vsel %vm346_vm0, %v1211_v33, %v1210_v31  ;;  %v2192_v38 = vpack.i.bf16 %v1241_v11, %v1240_v3  ;;  %v1208_v39 = vsel %vm341_vm1, %v1206_v15, %v1207_v32 }
 0x889   :  { %v2187_v40 = vpack.i.bf16 %v1213_v37, %v1212_v36  ;;  %v1209_v41 = vsel %vm341_vm1, %v1207_v32, %v1206_v15  ;;  %2018 = vmatpush3.bf16.msra.mxu1 %v2265_v14  ;;  %v2269_v14 = vld [vmem:[#allocation29 + $0x10] sm:$0xff]  }
 0x88a   :  { %2019 = vmatprep.subr.bf16.mxu1 %v2266_v29 }
 0x88b   :  { %2188 = vrot.lane.b32.xlu1 %v2187_v40, %s2782_s22 }
 0x88c   :  { %2183 = vrot.lane.b32.xlu0 %v2182_v30, %s2807_s18 }
 0x88d   :  { %2020 = vmatpush3.bf16.msra.mxu1 %v2266_v29 }
 0x88f   :  { %2193 = vrot.lane.b32.xlu1 %v2192_v38, %s2782_s22 }
 0x8fa   :  { %v2179_v42 = vpop.permute.xlu0 %2178 }
 0x8fb   :  { %v2181_v43 = vunpack.i.h.bf16 %v2179_v42  ;;  %v2180_v44 = vunpack.i.l.bf16 %v2179_v42 }
 0x8fd   :  { %v2189_v45 = vpop.permute.xlu1 %2188  ;;  %v1230_v49 = vsel %vm508_vm6, %v1209_v41, %v2180_v44  ;;  %v1231_v50 = vsel %vm508_vm6, %v1208_v39, %v2181_v43 }
 0x8fe   :  { %v2191_v46 = vunpack.i.h.bf16 %v2189_v45  ;;  %v2190_v47 = vunpack.i.l.bf16 %v2189_v45  ;;  %v2184_v48 = vpop.permute.xlu0 %2183 }
 0x8ff   :  { %v2186_v51 = vunpack.i.h.bf16 %v2184_v48  ;;  %v2185_v52 = vunpack.i.l.bf16 %v2184_v48 }
 0x900   :  { %v1232_v53 = vsel %vm511_vm7, %v1230_v49, %v2190_v47  ;;  %v1233_v54 = vsel %vm511_vm7, %v1231_v50, %v2191_v46 }
 0x901   :  { %v1262_v55 = vpack.c.bf16 %v1233_v54, %v1232_v53  ;;  %v2194_v56 = vpop.permute.xlu1 %2193  ;;  %v1259_v59 = vsel %vm508_vm6, %v1236_v34, %v2186_v51  ;;  %v1258_v60 = vsel %vm508_vm6, %v1237_v35, %v2185_v52 }
 0x902   :  { %v2196_v57 = vunpack.i.h.bf16 %v2194_v56  ;;  %v2195_v58 = vunpack.i.l.bf16 %v2194_v56 }
 0x903   :  { %2011 = vmatprep.mubr.msk.bf16.mxu0 %vm599_vm8, %v1262_v55 }
 0x904   :  { %v1261_v61 = vsel %vm511_vm7, %v1259_v59, %v2196_v57  ;;  %v1260_v62 = vsel %vm511_vm7, %v1258_v60, %v2195_v58 }
 0x905   :  { %v1263_v63 = vpack.c.bf16 %v1261_v61, %v1260_v62 }
 0x907   :  { %2012 = vmatmul.mubr.msk.bf16.vlgmr.msra.gmra.mrb[16].mxu0 %vm599_vm8, %v1263_v63 }
 0x908   :  { %2042 = vmatpush3.bf16.msra.mxu0 %v2263_v0 }
 0x9da   :  { %v2013_v7 = vpop.f32.mrb[16].mxu0 }
 0x9db   :  { %v1368_v8 = vadd.f32 %v2013_v7, %v1848_v5  ;;  %v1359_v10 = vpop.f32.mrb[17].mxu0 }
 0x9dc   :  { %v1360_v12 = vadd.f32 %v1848_v5, %v1359_v10  ;;  %v2014_v13 = vpop.f32.mrb[18].mxu0 }
 0x9dd   :  { %v1376_v16 = vmax.f32 %v1368_v8, 0.0  ;;  %v1371_v17 = vadd.f32 %v2014_v13, %v1848_v5  ;;  %v1362_v19 = vpop.f32.mrb[19].mxu0  ;;  %v2268_v13 = vld [vmem:[#allocation29 + $0x8] sm:$0xff]  }
 0x9de   :  { %v1374_v20 = vmax.f32 %v1360_v12, 0.0  ;;  %v1363_v24 = vadd.f32 %v1848_v5, %v1362_v19  ;;  %v2267_v12 = vld [vmem:[#allocation29] sm:$0xff]  }
 0x9df   :  { %v1380_v25 = vadd.f32 %v1376_v16, %v3385_v27  ;;  %v1377_v4 = vmax.f32 %v1371_v17, 0.0  ;;  %2025 = vmatprep.subr.bf16.mxu1 %v2267_v12  ;;  %v2270_v16 = vld [vmem:[#allocation29 + $0x18] sm:$0xff]  }
 0x9e0   :  { %v1378_v9 = vadd.f32 %v1374_v20, %v3379_v21  ;;  %v1375_v18 = vmax.f32 %v1363_v24, 0.0  ;;  %v1857_v17 = vld [vmem:[#allocation28] ss:$0 sm:$0xff]  ;;  %v2271_v20 = vld [vmem:[#allocation29 + $0x20] sm:$0xff]  }
 0x9e1   :  { %v1410_v15 = vrot.slane %v1380_v25, 6  ;;  %v1381_v22 = vadd.f32 %v1377_v4, %v3382_v26  ;;  %v1414_v32 = vrot.slane %v1380_v25, 2 }
 0x9e2   :  { %v1382_v23 = vrot.slane %v1378_v9, 6  ;;  %v1379_v30 = vadd.f32 %v1375_v18, %v3388_v28  ;;  %v1386_v31 = vrot.slane %v1378_v9, 2 }
 0x9e3   :  { %v1411_v33 = vrot.slane %v1381_v22, 6  ;;  %v1703_v2 = vpack.c.bf16 %v1381_v22, %v1380_v25  ;;  %v2202_v3 = vpack.i.bf16 %v1381_v22, %v1380_v25  ;;  %v1415_v11 = vrot.slane %v1381_v22, 2 }
 0x9e4   :  { %v1383_v27 = vrot.slane %v1379_v30, 6  ;;  %v2197_v34 = vpack.i.bf16 %v1379_v30, %v1378_v9  ;;  %v1702_v35 = vpack.c.bf16 %v1379_v30, %v1378_v9  ;;  %v1387_v21 = vrot.slane %v1379_v30, 2  ;;  %v2272_v30 = vld [vmem:[#allocation29 + $0x28] sm:$0xff]  }
 0x9e5   :  { %v1416_v36 = vsel %vm738_vm9, %v1414_v32, %v1415_v11  ;;  %v1417_v26 = vsel %vm738_vm9, %v1415_v11, %v1414_v32  ;;  %v1412_v28 = vsel %vm733_vm10, %v1410_v15, %v1411_v33  ;;  %v1413_v37 = vsel %vm733_vm10, %v1411_v33, %v1410_v15 }
 0x9e6   :  { %2198 = vrot.lane.b32.xlu0 %v2197_v34, %s2806_s30  ;;  %2043 = vmatprep.mubr.msk.bf16.mxu0 %vm368_vm4, %v1702_v35  ;;  %v1388_v38 = vsel %vm738_vm9, %v1386_v31, %v1387_v21  ;;  %v1389_v39 = vsel %vm738_vm9, %v1387_v21, %v1386_v31  ;;  %v2212_v40 = vpack.i.bf16 %v1417_v26, %v1416_v36 }
 0x9e7   :  { %2044 = vmatmul.mubr.msk.bf16.vlgmr.msra.gmra.mrb[20].mxu0 %vm368_vm4, %v1703_v2  ;;  %v2207_v41 = vpack.i.bf16 %v1389_v39, %v1388_v38  ;;  %v1384_v42 = vsel %vm733_vm10, %v1382_v23, %v1383_v27  ;;  %v1385_v43 = vsel %vm733_vm10, %v1383_v27, %v1382_v23 }
 0x9e9   :  { %2208 = vrot.lane.b32.xlu1 %v2207_v41, %s2807_s18 }
 0x9ea   :  { %2203 = vrot.lane.b32.xlu0 %v2202_v3, %s2806_s30 }
 0x9ed   :  { %2213 = vrot.lane.b32.xlu1 %v2212_v40, %s2807_s18 }
 0xa58   :  { %v2199_v44 = vpop.permute.xlu0 %2198 }
 0xa59   :  { %v2201_v45 = vunpack.i.h.bf16 %v2199_v44  ;;  %v2200_v46 = vunpack.i.l.bf16 %v2199_v44 }
 0xa5b   :  { %v2209_v47 = vpop.permute.xlu1 %2208  ;;  %v1406_v51 = vsel %vm368_vm4, %v1385_v43, %v2200_v46  ;;  %v1407_v52 = vsel %vm368_vm4, %v1384_v42, %v2201_v45 }
 0xa5c   :  { %v2211_v48 = vunpack.i.h.bf16 %v2209_v47  ;;  %v2210_v49 = vunpack.i.l.bf16 %v2209_v47  ;;  %v2204_v50 = vpop.permute.xlu0 %2203 }
 0xa5d   :  { %v2206_v53 = vunpack.i.h.bf16 %v2204_v50  ;;  %v2205_v54 = vunpack.i.l.bf16 %v2204_v50 }
 0xa5e   :  { %v1408_v55 = vsel %vm508_vm6, %v1406_v51, %v2210_v49  ;;  %v1409_v56 = vsel %vm508_vm6, %v1407_v52, %v2211_v48 }
 0xa5f   :  { %v1438_v57 = vpack.c.bf16 %v1409_v56, %v1408_v55  ;;  %v2214_v58 = vpop.permute.xlu1 %2213  ;;  %v1435_v61 = vsel %vm368_vm4, %v1412_v28, %v2206_v53  ;;  %v1434_v62 = vsel %vm368_vm4, %v1413_v37, %v2205_v54 }
 0xa60   :  { %v2216_v59 = vunpack.i.h.bf16 %v2214_v58  ;;  %v2215_v60 = vunpack.i.l.bf16 %v2214_v58 }
 0xa61   :  { %2021 = vmatprep.mubr.msk.bf16.mxu1 %vm822_vm11, %v1438_v57 }
 0xa62   :  { %v1437_v63 = vsel %vm508_vm6, %v1435_v61, %v2216_v59  ;;  %v1436_v0 = vsel %vm508_vm6, %v1434_v62, %v2215_v60 }
 0xa63   :  { %v1439_v5 = vpack.c.bf16 %v1437_v63, %v1436_v0 }
 0xa65   :  { %2022 = vmatmul.mubr.msk.bf16.vlgmr.msra.gmra.mrb[8].mxu1 %vm822_vm11, %v1439_v5 }
 0xa66   :  { %2026 = vmatpush3.bf16.msra.mxu1 %v2267_v12 }
 0xa67   :  { %2027 = vmatprep.subr.bf16.mxu1 %v2268_v13 }
 0xa6a   :  { %2028 = vmatpush3.bf16.msra.mxu1 %v2268_v13  ;;  %v1863_v13 = vld [vmem:[#allocation31] ss:$0 sm:$0xff] }
 0xa6b   :  { %2029 = vmatprep.subr.bf16.mxu1 %v2269_v14 }
 0xa6e   :  { %2030 = vmatpush3.bf16.msra.mxu1 %v2269_v14  ;;  %v1872_v14 = vld [vmem:[#allocation34] ss:$0 sm:$0xff] }
 0xa6f   :  { %2031 = vmatprep.subr.bf16.mxu1 %v2270_v16 }
 0xa72   :  { %2032 = vmatpush3.bf16.msra.mxu1 %v2270_v16 }
 0xa73   :  { %2033 = vmatprep.subr.bf16.mxu1 %v2271_v20 }
 0xa76   :  { %2034 = vmatpush3.bf16.msra.mxu1 %v2271_v20 }
 0xa77   :  { %2035 = vmatprep.subr.bf16.mxu1 %v2272_v30 }
 0xa7a   :  { %2036 = vmatpush3.bf16.msra.mxu1 %v2272_v30 }
 0xaba   :  { %v3498_v6 = vpop.f32.mrb[20].mxu0 }
 0xabb   :  { %v3500_v7 = vpop.f32.mrb[21].mxu0 }
 0xabc   :  { %v3502_v8 = vpop.f32.mrb[22].mxu0 }
 0xabd   :  { %v3504_v10 = vpop.f32.mrb[23].mxu0 }
 0xb38   :  { %v2023_v19 = vpop.f32.mrb[8].mxu1 }
 0xb39   :  { %v1520_v24 = vadd.f32 %v2023_v19, %v1857_v17  ;;  %v1511_v25 = vpop.f32.mrb[9].mxu1 }
 0xb3a   :  { %v1512_v4 = vadd.f32 %v1857_v17, %v1511_v25  ;;  %v2024_v9 = vpop.f32.mrb[10].mxu1  ;;  %v1768_v25 = vadd.f32 %v3498_v6, %v1872_v14 }
 0xb3b   :  { %v1528_v18 = vmax.f32 %v1520_v24, 0.0  ;;  %v1523_v29 = vadd.f32 %v2024_v9, %v1857_v17  ;;  %v1514_v15 = vpop.f32.mrb[11].mxu1 }
 0xb3c   :  { %v1526_v22 = vmax.f32 %v1512_v4, 0.0  ;;  %v1515_v23 = vadd.f32 %v1857_v17, %v1514_v15 }
 0xb3d   :  { %v1529_v31 = vmax.f32 %v1523_v29, 0.0  ;;  %v1558_v32 = vrot.slane %v1528_v18, 6  ;;  %v1562_v33 = vrot.slane %v1528_v18, 2  ;;  %v1760_v29 = vadd.f32 %v1872_v14, %v3500_v7 }
 0xb3e   :  { %v1527_v2 = vmax.f32 %v1515_v23, 0.0  ;;  %v1530_v3 = vrot.slane %v1526_v22, 6  ;;  %v1534_v35 = vrot.slane %v1526_v22, 2  ;;  %v1771_v23 = vadd.f32 %v3502_v8, %v1872_v14 }
 0xb3f   :  { %v1559_v11 = vrot.slane %v1529_v31, 6  ;;  %v1563_v27 = vrot.slane %v1529_v31, 2  ;;  %v2227_v34 = vpack.i.bf16 %v1529_v31, %v1528_v18 }
 0xb40   :  { %v1531_v21 = vrot.slane %v1527_v2, 6  ;;  %v1535_v36 = vrot.slane %v1527_v2, 2  ;;  %v2217_v26 = vpack.i.bf16 %v1527_v2, %v1526_v22 }
 0xb41   :  { %v1564_v28 = vsel %vm738_vm9, %v1562_v33, %v1563_v27  ;;  %v1565_v37 = vsel %vm738_vm9, %v1563_v27, %v1562_v33  ;;  %v1560_v38 = vsel %vm733_vm10, %v1558_v32, %v1559_v11  ;;  %v1561_v39 = vsel %vm733_vm10, %v1559_v11, %v1558_v32 }
 0xb42   :  { %2218 = vrot.lane.b32.xlu0 %v2217_v26, %s2807_s18  ;;  %v1536_v40 = vsel %vm738_vm9, %v1534_v35, %v1535_v36  ;;  %v1537_v41 = vsel %vm738_vm9, %v1535_v36, %v1534_v35  ;;  %v2232_v42 = vpack.i.bf16 %v1565_v37, %v1564_v28  ;;  %v1532_v43 = vsel %vm733_vm10, %v1530_v3, %v1531_v21 }
 0xb43   :  { %v2222_v44 = vpack.i.bf16 %v1537_v41, %v1536_v40  ;;  %v1533_v45 = vsel %vm733_vm10, %v1531_v21, %v1530_v3  ;;  %v1763_v32 = vadd.f32 %v1872_v14, %v3504_v10 }
 0xb45   :  { %2223 = vrot.lane.b32.xlu1 %v2222_v44, %s2782_s22 }
 0xb46   :  { %2228 = vrot.lane.b32.xlu0 %v2227_v34, %s2807_s18 }
 0xb49   :  { %2233 = vrot.lane.b32.xlu1 %v2232_v42, %s2782_s22  ;;  %s2808_s22 = smov [#allocation35]  }
 0xb4a   :  { %s1788_s11 = sshll.u32 %s2808_s22, 4  ;;  %s1789_s11 = int_to_ptr.vmem [resolvable:$true] %s1788_s11 }
 0xb4b   :  { %s2735_s26 = scalar_lea.vmem %s1789_s11, 512  ;;  %p2740_p1 = scmp.lt.s32.totalorder %s1789_s11, %s1789_s11 }
 0xb4c   :  { %p2736_p0 = scmp.ne.s32.totalorder %s1789_s11, %s2735_s26  ;;  %p2741_p2 = scmp.lt.s32.totalorder %s2735_s26, %s2735_s26 }
 0xb4e   :  { %p2742_p3 = por %p2741_p2, %p2740_p1 }
 0xb50   :  { %p2743_p4 = pnand %p2742_p3, %p2736_p0 }
 0xbb4   :  { %v2219_v46 = vpop.permute.xlu0 %2218 }
 0xbb5   :  { %v2221_v47 = vunpack.i.h.bf16 %v2219_v46  ;;  %v2220_v48 = vunpack.i.l.bf16 %v2219_v46 }
 0xbb7   :  { %v2224_v49 = vpop.permute.xlu1 %2223  ;;  %v1554_v53 = vsel %vm508_vm6, %v1533_v45, %v2220_v48  ;;  %v1555_v54 = vsel %vm508_vm6, %v1532_v43, %v2221_v47 }
 0xbb8   :  { %v2226_v50 = vunpack.i.h.bf16 %v2224_v49  ;;  %v2225_v51 = vunpack.i.l.bf16 %v2224_v49  ;;  %v2229_v52 = vpop.permute.xlu0 %2228 }
 0xbb9   :  { %v2231_v55 = vunpack.i.h.bf16 %v2229_v52  ;;  %v2230_v1 = vunpack.i.l.bf16 %v2229_v52 }
 0xbba   :  { %v1556_v56 = vsel %vm511_vm7, %v1554_v53, %v2225_v51  ;;  %v1557_v57 = vsel %vm511_vm7, %v1555_v54, %v2226_v50 }
 0xbbb   :  { %v1586_v58 = vpack.c.bf16 %v1557_v57, %v1556_v56  ;;  %v2234_v59 = vpop.permute.xlu1 %2233  ;;  %v1583_v62 = vsel %vm508_vm6, %v1560_v38, %v2231_v55  ;;  %v1582_v63 = vsel %vm508_vm6, %v1561_v39, %v2230_v1 }
 0xbbc   :  { %v2236_v60 = vunpack.i.h.bf16 %v2234_v59  ;;  %v2235_v61 = vunpack.i.l.bf16 %v2234_v59 }
 0xbbd   :  { %2037 = vmatprep.mubr.msk.bf16.mxu1 %vm599_vm8, %v1586_v58 }
 0xbbe   :  { %v1585_v0 = vsel %vm511_vm7, %v1583_v62, %v2236_v60  ;;  %v1584_v5 = vsel %vm511_vm7, %v1582_v63, %v2235_v61 }
 0xbbf   :  { %v1587_v12 = vpack.c.bf16 %v1585_v0, %v1584_v5 }
 0xbc1   :  { %2038 = vmatmul.mubr.msk.bf16.vlgmr.msra.gmra.mrb[12].mxu1 %vm599_vm8, %v1587_v12 }
 0xc94   :  { %v2039_v16 = vpop.f32.mrb[12].mxu1 }
 0xc95   :  { %v1692_v17 = vadd.f32 %v2039_v16, %v1863_v13  ;;  %v1683_v19 = vpop.f32.mrb[13].mxu1 }
 0xc96   :  { %v1684_v20 = vadd.f32 %v1863_v13, %v1683_v19  ;;  %v2040_v24 = vpop.f32.mrb[14].mxu1 }
 0xc97   :  { %v1700_v4 = vmax.f32 %v1692_v17, 0.0  ;;  %v1695_v9 = vadd.f32 %v2040_v24, %v1863_v13  ;;  %v1686_v18 = vpop.f32.mrb[15].mxu1 }
 0xc98   :  { %v1698_v15 = vmax.f32 %v1684_v20, 0.0  ;;  %v1687_v22 = vadd.f32 %v1863_v13, %v1686_v18 }
 0xc99   :  { %v1776_v30 = vadd.f32 %v1768_v25, %v1700_v4  ;;  %v1701_v31 = vmax.f32 %v1695_v9, 0.0 }
 0xc9a   :  { %v1774_v33 = vadd.f32 %v1760_v29, %v1698_v15  ;;  %v1699_v2 = vmax.f32 %v1687_v22, 0.0 }
 0xc9b   :  { %1781 = vst.msk [vmem:[#allocation35 + $0x10] sm:$0xff] %vm365_vm3, %v1776_v30  ;;  %v1777_v6 = vadd.f32 %v1771_v23, %v1701_v31 }
 0xc9c   :  { %1778 = vst.msk [vmem:[#allocation35] sm:$0xff] %vm365_vm3, %v1774_v33  ;;  %v1775_v3 = vadd.f32 %v1763_v32, %v1699_v2 }
 0xc9d   :  { %1782 = vst.msk [vmem:[#allocation35 + $0x18] sm:$0xff] %vm365_vm3, %v1777_v6 }
 0xc9e   :  { %1779 = vst.msk [vmem:[#allocation35 + $0x8] sm:$0xff] %vm365_vm3, %v1775_v3 }
 0xc9f   :  { %2746 = shalt.err (!%p2743_p4)
}
 0xca0   :  { %s3607_s4 = sld [smem:[#allocation56_spill]] }
 0xca6   :  { %s2747_s21 = scalar_lea.hbm %s3607_s4, 512 }
 0xca7   :  { %p2748_p5 = scmp.ne.s32.totalorder %s3607_s4, %s2747_s21  ;;  %p2751_p6 = scmp.lt.u32.totalorder %s2747_s21, %s3607_s4 }
 0xca9   :  { %p2753_p7 = pnand %p2751_p6, %p2748_p5 }
 0xcab   :  { %2756 = shalt.err (!%p2753_p7)
}
 0xcac   :  { %1794 = dma.vmem_to_hbm [thread:$0]  %s1789_s11, 512, %s3607_s4, [#allocation4], %s2794_s19, %s2794_s19, %s2795_s23  }
 0xcad   :  { %2779 = dma.done.wait [#allocation4], 512  }
 0xcae   :  { %2780 = vsyncadd [#allocation4], 4294966784 }
 0xcaf   :  { %1798 = vsyncpa [#allocation3], 1 }
 0xcb0   :  { %1799 = vsyncpa [#allocation6], 1 }
 0xcb1   :  { %1800 = vsyncpa [#allocation9], 1 }
 0xcb2   :  { %1801 = vsyncpa [#allocation12], 1 }
 0xcb3   :  { %1802 = vsyncpa [#allocation15], 1 }
 0xcb4   :  { %1803 = vsyncpa [#allocation18], 1 }
 0xcb5   :  { %1804 = vsyncpa [#allocation21], 1 }
 0xcb6   :  { %1805 = vsyncpa [#allocation24], 1 }
 0xcb7   :  { %1806 = vsyncpa [#allocation27], 1 }
 0xcb8   :  { %1807 = vsyncpa [#allocation30], 1 }
 0xcb9   :  { %1808 = vsyncpa [#allocation33], 1 }
 0xcba   :  { %1809 = vsyncpa [#allocation4], 1 }

</bundles_post_ra>
